<compile_context>
chip_gen: v7x
topology: tpu7x:2x2x1
jax: 0.10.0
libtpu: 0.0.40
codegen_flags: <defaults>
</compile_context>

<pallas_src>
import functools

import jax
import jax.numpy as jnp
from jax import lax
from jax.experimental import pallas as pl

# ----------------------------- small BERT config -----------------------------
VOCAB = 100
TYPE_VOCAB = 2
MAX_POS = 16
HIDDEN = 32
N_HEADS = 2
HEAD_DIM = HIDDEN // N_HEADS
INTER = 64
N_LAYERS = 2
LN_EPS = 1e-12
ATTN_SCALE = 1.0 / float(HEAD_DIM) ** 0.5
LANE = 128  # lane width used for the packed-vector rows and padded outputs

# ------------------------ packed bias/LN vector layout ------------------------
R_EMB_G, R_EMB_B, R_POOL_B = 0, 1, 2
LAYER_ROW0 = 3
ROWS_PER_LAYER = 13            # bq(h),bk(h),bv(h) x heads, bo, ln1_g/b, bi, bo2, ln2_g/b


def _bq(h):
    return h


def _bk(h):
    return N_HEADS + h


def _bv(h):
    return 2 * N_HEADS + h


RO_BO, RO_LN1G, RO_LN1B, RO_BI, RO_BO2, RO_LN2G, RO_LN2B = 6, 7, 8, 9, 10, 11, 12
N_VEC_ROWS = LAYER_ROW0 + N_LAYERS * ROWS_PER_LAYER      # 29
N_VEC_ROWS_PAD = 32                                       # sublane-aligned


# ------------------------------- fused kernel --------------------------------
def _layernorm(y, g, b):
    mean = jnp.mean(y, axis=-1, keepdims=True)
    var = jnp.mean((y - mean) ** 2, axis=-1, keepdims=True)
    return (y - mean) * lax.rsqrt(var + LN_EPS) * g + b


def _gelu(y):
    # TODO(synk): HF BERT default uses exact (erf) GELU; tanh approximation used here.
    c = 0.7978845608028654  # sqrt(2/pi)
    return 0.5 * y * (1.0 + jnp.tanh(c * (y + 0.044715 * y * y * y)))


def _bert_kernel(x_ref, mask_ref, vecs_ref,
                 wq_ref, wk_ref, wv_ref, wo_ref, wi_ref, wo2_ref, poolw_ref,
                 hid_ref, pooled_ref, *, batch, seq):
    """Single invocation: whole encoder + pooler, everything resident in VMEM."""

    def vec(row, n):  # one packed bias/LN row, always at lane offset 0
        return vecs_ref[row:row + 1, 0:n]                     # [1, n]

    x = x_ref[...]                                            # [B*S, H]
    mask = mask_ref[...]                                      # [B*S, B*S] additive

    # embedding LayerNorm
    x = _layernorm(x, vec(R_EMB_G, HIDDEN), vec(R_EMB_B, HIDDEN))

    for l in range(N_LAYERS):                                  # static unroll
        base = LAYER_ROW0 + l * ROWS_PER_LAYER

        # --- self attention: per-head weights indexed along leading ref dims,
        #     so no lane-offset slices of activations anywhere. Head-concat +
        #     output projection folded into per-head partial matmuls.
        attn = None
        for h in range(N_HEADS):                               # static unroll
            w_idx = l * N_HEADS + h
            q = (jnp.dot(x, wq_ref[w_idx], preferred_element_type=jnp.float32)
                 + vec(base + _bq(h), HEAD_DIM))
            k = (jnp.dot(x, wk_ref[w_idx], preferred_element_type=jnp.float32)
                 + vec(base + _bk(h), HEAD_DIM))
            v = (jnp.dot(x, wv_ref[w_idx], preferred_element_type=jnp.float32)
                 + vec(base + _bv(h), HEAD_DIM))
            # contract on head_dim directly — no explicit transpose of k
            s = lax.dot_general(q, k, (((1,), (1,)), ((), ())),
                                preferred_element_type=jnp.float32)
            s = s * ATTN_SCALE + mask
            s = s - jnp.max(s, axis=-1, keepdims=True)
            p = jnp.exp(s)
            p = p * pl.reciprocal(jnp.sum(p, axis=-1, keepdims=True), approx=True)
            ctx = jnp.dot(p, v, preferred_element_type=jnp.float32)        # [B*S, dh]
            part = jnp.dot(ctx, wo_ref[w_idx],
                           preferred_element_type=jnp.float32)             # [B*S, H]
            attn = part if attn is None else attn + part
        attn = attn + vec(base + RO_BO, HIDDEN)

        # residual + LayerNorm fused
        x = _layernorm(attn + x, vec(base + RO_LN1G, HIDDEN),
                       vec(base + RO_LN1B, HIDDEN))

        # feed-forward: bias + GELU + bias + residual + LayerNorm fused
        hmid = _gelu(jnp.dot(x, wi_ref[l], preferred_element_type=jnp.float32)
                     + vec(base + RO_BI, INTER))
        ffn = (jnp.dot(hmid, wo2_ref[l], preferred_element_type=jnp.float32)
               + vec(base + RO_BO2, HIDDEN))
        x = _layernorm(ffn + x, vec(base + RO_LN2G, HIDDEN),
                       vec(base + RO_LN2B, HIDDEN))

    # --- lane-dense (128-wide) stores: unmasked vst instead of vst.msk ---
    hid_ref[...] = jnp.concatenate(
        [x, jnp.zeros((batch * seq, LANE - HIDDEN), jnp.float32)], axis=1)

    # --- pooler only on the CLS rows (one per batch), fused in-kernel ---
    cls = jnp.concatenate([x[b * seq:b * seq + 1, :] for b in range(batch)], axis=0)
    pooled = jnp.tanh(
        jnp.dot(cls, poolw_ref[...], preferred_element_type=jnp.float32)
        + vec(R_POOL_B, HIDDEN))                                            # [B, H]
    pooled_ref[...] = jnp.concatenate(
        [pooled, jnp.zeros((batch, LANE - HIDDEN), jnp.float32)], axis=1)


# ----------------------------- parameter init --------------------------------
def init_params(key):
    keys = iter(jax.random.split(key, 64))

    def dense(shape):
        return jax.random.normal(next(keys), shape, jnp.float32) * 0.02

    params = {
        "word_emb": dense((VOCAB, HIDDEN)),
        "pos_emb": dense((MAX_POS, HIDDEN)),
        "type_emb": dense((TYPE_VOCAB, HIDDEN)),
        "emb_ln_g": jnp.ones((HIDDEN,), jnp.float32),
        "emb_ln_b": jnp.zeros((HIDDEN,), jnp.float32),
        "pool_w": dense((HIDDEN, HIDDEN)),
        "pool_b": jnp.zeros((HIDDEN,), jnp.float32),
        "layers": [],
    }
    for _ in range(N_LAYERS):
        params["layers"].append({
            "wq": dense((HIDDEN, HIDDEN)), "bq": jnp.zeros((HIDDEN,), jnp.float32),
            "wk": dense((HIDDEN, HIDDEN)), "bk": jnp.zeros((HIDDEN,), jnp.float32),
            "wv": dense((HIDDEN, HIDDEN)), "bv": jnp.zeros((HIDDEN,), jnp.float32),
            "wo": dense((HIDDEN, HIDDEN)), "bo": jnp.zeros((HIDDEN,), jnp.float32),
            "ln1_g": jnp.ones((HIDDEN,), jnp.float32),
            "ln1_b": jnp.zeros((HIDDEN,), jnp.float32),
            "wi": dense((HIDDEN, INTER)), "bi": jnp.zeros((INTER,), jnp.float32),
            "wo2": dense((INTER, HIDDEN)), "bo2": jnp.zeros((HIDDEN,), jnp.float32),
            "ln2_g": jnp.ones((HIDDEN,), jnp.float32),
            "ln2_b": jnp.zeros((HIDDEN,), jnp.float32),
        })
    return params


# ------------------------ one-time weight pre-packing -------------------------
def pack_params(params):
    """Runs ONCE (outside jit): head-major weight stacks + one packed vector slab."""
    layers = params["layers"]

    def pad_row(v):
        v = jnp.asarray(v, jnp.float32).reshape(-1)
        return jnp.pad(v, (0, LANE - v.shape[0]))

    rows = [None] * N_VEC_ROWS_PAD
    rows[R_EMB_G] = pad_row(params["emb_ln_g"])
    rows[R_EMB_B] = pad_row(params["emb_ln_b"])
    rows[R_POOL_B] = pad_row(params["pool_b"])

    wq, wk, wv, wo, wi, wo2 = [], [], [], [], [], []
    for l, lyr in enumerate(layers):
        base = LAYER_ROW0 + l * ROWS_PER_LAYER
        for h in range(N_HEADS):
            sl = slice(h * HEAD_DIM, (h + 1) * HEAD_DIM)
            wq.append(lyr["wq"][:, sl])
            wk.append(lyr["wk"][:, sl])
            wv.append(lyr["wv"][:, sl])
            wo.append(lyr["wo"][sl, :])
            rows[base + _bq(h)] = pad_row(lyr["bq"][sl])
            rows[base + _bk(h)] = pad_row(lyr["bk"][sl])
            rows[base + _bv(h)] = pad_row(lyr["bv"][sl])
        rows[base + RO_BO] = pad_row(lyr["bo"])
        rows[base + RO_LN1G] = pad_row(lyr["ln1_g"])
        rows[base + RO_LN1B] = pad_row(lyr["ln1_b"])
        rows[base + RO_BI] = pad_row(lyr["bi"])
        rows[base + RO_BO2] = pad_row(lyr["bo2"])
        rows[base + RO_LN2G] = pad_row(lyr["ln2_g"])
        rows[base + RO_LN2B] = pad_row(lyr["ln2_b"])
        wi.append(lyr["wi"])
        wo2.append(lyr["wo2"])

    zero = jnp.zeros((LANE,), jnp.float32)
    vecs = jnp.stack([r if r is not None else zero for r in rows], axis=0)

    return {
        "word_emb": params["word_emb"],
        "pos_emb": params["pos_emb"],
        "type_emb": params["type_emb"],
        "vecs": vecs,                                   # [32, 128]
        "wq": jnp.stack(wq), "wk": jnp.stack(wk),       # [L*NH, H, HD]
        "wv": jnp.stack(wv),
        "wo": jnp.stack(wo),                            # [L*NH, HD, H]
        "wi": jnp.stack(wi),                            # [L, H, INTER]
        "wo2": jnp.stack(wo2),                          # [L, INTER, H]
        "pool_w": params["pool_w"],                     # [H, H]
    }


# --------------------------------- forward -----------------------------------
def bert_forward(packed, input_ids, attention_mask, token_type_ids):
    B, S = input_ids.shape
    BS = B * S

    # Embedding lookups (gathers) stay in plain JAX glue; flatten to [B*S, H].
    pos_ids = jnp.arange(S)
    emb = (jnp.take(packed["word_emb"], input_ids.reshape(BS), axis=0)
           + jnp.tile(jnp.take(packed["pos_emb"], pos_ids, axis=0), (B, 1))
           + jnp.take(packed["type_emb"], token_type_ids.reshape(BS), axis=0)
           ).astype(jnp.float32)                                  # [B*S, H]

    # Block-diagonal additive mask over flattened tokens: a query may only
    # attend to non-padded keys of its own batch element (0 / -1e9).
    batch_of = jnp.arange(BS) // S
    same_batch = batch_of[:, None] == batch_of[None, :]
    key_valid = (attention_mask.reshape(BS) > 0)[None, :]
    mask2d = jnp.where(same_batch & key_valid, 0.0, -1e9).astype(jnp.float32)

    kernel = functools.partial(_bert_kernel, batch=B, seq=S)
    hid_pad, pooled_pad = pl.pallas_call(
        kernel,
        out_shape=(jax.ShapeDtypeStruct((BS, LANE), jnp.float32),
                   jax.ShapeDtypeStruct((B, LANE), jnp.float32)),
    )(emb, mask2d, packed["vecs"],
      packed["wq"], packed["wk"], packed["wv"], packed["wo"],
      packed["wi"], packed["wo2"], packed["pool_w"])

    last_hidden = hid_pad[:, :HIDDEN].reshape(B, S, HIDDEN)
    pooled = pooled_pad[:, :HIDDEN]
    return last_hidden, pooled


# ----------------------------------- main -------------------------------------
if __name__ == "__main__":
    B, S = 2, 8
    key = jax.random.PRNGKey(0)
    k_par, k_ids, k_mask = jax.random.split(key, 3)

    params = init_params(k_par)
    packed = pack_params(params)          # one-time packing, outside jit

    input_ids = jax.random.randint(k_ids, (B, S), 0, VOCAB, dtype=jnp.int32)
    # first sequence fully attended, second has 2 padding tokens at the end
    attention_mask = jnp.array(
        [[1] * S, [1] * (S - 2) + [0] * 2], dtype=jnp.int32)
    token_type_ids = jnp.concatenate(
        [jnp.zeros((B, S // 2), jnp.int32), jnp.ones((B, S // 2), jnp.int32)],
        axis=1)

    last_hidden, pooled = jax.jit(bert_forward)(
        packed, input_ids, attention_mask, token_type_ids)
    jax.block_until_ready((last_hidden, pooled))

    assert last_hidden.shape == (B, S, HIDDEN)
    assert pooled.shape == (B, HIDDEN)
    assert bool(jnp.all(jnp.isfinite(last_hidden)))
    assert bool(jnp.all(jnp.isfinite(pooled)))
    print("KERNEL_OK")
</pallas_src>

<mosaic_0001>
module attributes {stable_mosaic.version = 11 : i64} {
  func.func @_bert_kernel(%arg0: memref<16x32xf32, #tpu.memory_space<vmem>>, %arg1: memref<16x16xf32, #tpu.memory_space<vmem>>, %arg2: memref<32x128xf32, #tpu.memory_space<vmem>>, %arg3: memref<4x32x16xf32, #tpu.memory_space<vmem>>, %arg4: memref<4x32x16xf32, #tpu.memory_space<vmem>>, %arg5: memref<4x32x16xf32, #tpu.memory_space<vmem>>, %arg6: memref<4x16x32xf32, #tpu.memory_space<vmem>>, %arg7: memref<2x32x64xf32, #tpu.memory_space<vmem>>, %arg8: memref<2x64x32xf32, #tpu.memory_space<vmem>>, %arg9: memref<32x32xf32, #tpu.memory_space<vmem>>, %arg10: memref<16x128xf32, #tpu.memory_space<vmem>>, %arg11: memref<2x128xf32, #tpu.memory_space<vmem>>) attributes {dimension_semantics = [], scalar_prefetch = 0 : i64, scratch_operands = 0 : i64, tpu.core_type = #tpu.core_type<tc>} {
    %c0 = arith.constant 0 : index
    %c0_0 = arith.constant 0 : index
    %0 = vector.load %arg0[%c0, %c0_0] : memref<16x32xf32, #tpu.memory_space<vmem>>, vector<16x32xf32>
    %c0_1 = arith.constant 0 : index
    %c0_2 = arith.constant 0 : index
    %1 = vector.load %arg1[%c0_1, %c0_2] : memref<16x16xf32, #tpu.memory_space<vmem>>, vector<16x16xf32>
    %c0_3 = arith.constant 0 : index
    %c0_4 = arith.constant 0 : index
    %2 = vector.load %arg2[%c0_3, %c0_4] : memref<32x128xf32, #tpu.memory_space<vmem>>, vector<1x32xf32>
    %c1 = arith.constant 1 : index
    %c0_5 = arith.constant 0 : index
    %3 = vector.load %arg2[%c1, %c0_5] : memref<32x128xf32, #tpu.memory_space<vmem>>, vector<1x32xf32>
    %cst = arith.constant dense<0.000000e+00> : vector<16xf32>
    %4 = vector.multi_reduction <add>, %0, %cst [1] : vector<16x32xf32> to vector<16xf32>
    %5 = vector.shape_cast %4 : vector<16xf32> to vector<16x1xf32>
    %cst_6 = arith.constant 3.200000e+01 : f32
    %6 = vector.broadcast %cst_6 : f32 to vector<16x1xf32>
    %7 = arith.divf %5, %6 : vector<16x1xf32>
    %8 = vector.broadcast %7 : vector<16x1xf32> to vector<16x32xf32>
    %9 = arith.subf %0, %8 : vector<16x32xf32>
    %10 = arith.mulf %9, %9 : vector<16x32xf32>
    %cst_7 = arith.constant dense<0.000000e+00> : vector<16xf32>
    %11 = vector.multi_reduction <add>, %10, %cst_7 [1] : vector<16x32xf32> to vector<16xf32>
    %12 = vector.shape_cast %11 : vector<16xf32> to vector<16x1xf32>
    %cst_8 = arith.constant 3.200000e+01 : f32
    %13 = vector.broadcast %cst_8 : f32 to vector<16x1xf32>
    %14 = arith.divf %12, %13 : vector<16x1xf32>
    %15 = vector.broadcast %7 : vector<16x1xf32> to vector<16x32xf32>
    %16 = arith.subf %0, %15 : vector<16x32xf32>
    %cst_9 = arith.constant 9.99999996E-13 : f32
    %17 = vector.broadcast %cst_9 : f32 to vector<16x1xf32>
    %18 = arith.addf %14, %17 : vector<16x1xf32>
    %19 = math.rsqrt %18 : vector<16x1xf32>
    %20 = vector.broadcast %19 : vector<16x1xf32> to vector<16x32xf32>
    %21 = arith.mulf %16, %20 : vector<16x32xf32>
    %22 = vector.broadcast %2 : vector<1x32xf32> to vector<16x32xf32>
    %23 = arith.mulf %21, %22 : vector<16x32xf32>
    %24 = vector.broadcast %3 : vector<1x32xf32> to vector<16x32xf32>
    %25 = arith.addf %23, %24 : vector<16x32xf32>
    %c0_10 = arith.constant 0 : index
    %c0_11 = arith.constant 0 : index
    %c0_12 = arith.constant 0 : index
    %26 = vector.load %arg3[%c0_10, %c0_11, %c0_12] : memref<4x32x16xf32, #tpu.memory_space<vmem>>, vector<1x32x16xf32>
    %27 = vector.shape_cast %26 : vector<1x32x16xf32> to vector<32x16xf32>
    %cst_13 = arith.constant dense<0.000000e+00> : vector<16x16xf32>
    %28 = tpu.matmul %25, %27, %cst_13 {dimension_numbers = #tpu.dot_dimension_numbers<[1], [0], [0], [1], [0, 0, 1, 1], [], []>} : vector<16x32xf32>, vector<32x16xf32>, vector<16x16xf32> -> vector<16x16xf32>
    %c3 = arith.constant 3 : index
    %c0_14 = arith.constant 0 : index
    %29 = vector.load %arg2[%c3, %c0_14] : memref<32x128xf32, #tpu.memory_space<vmem>>, vector<1x16xf32>
    %30 = vector.broadcast %29 : vector<1x16xf32> to vector<16x16xf32>
    %31 = arith.addf %28, %30 : vector<16x16xf32>
    %c0_15 = arith.constant 0 : index
    %c0_16 = arith.constant 0 : index
    %c0_17 = arith.constant 0 : index
    %32 = vector.load %arg4[%c0_15, %c0_16, %c0_17] : memref<4x32x16xf32, #tpu.memory_space<vmem>>, vector<1x32x16xf32>
    %33 = vector.shape_cast %32 : vector<1x32x16xf32> to vector<32x16xf32>
    %cst_18 = arith.constant dense<0.000000e+00> : vector<16x16xf32>
    %34 = tpu.matmul %25, %33, %cst_18 {dimension_numbers = #tpu.dot_dimension_numbers<[1], [0], [0], [1], [0, 0, 1, 1], [], []>} : vector<16x32xf32>, vector<32x16xf32>, vector<16x16xf32> -> vector<16x16xf32>
    %c5 = arith.constant 5 : index
    %c0_19 = arith.constant 0 : index
    %35 = vector.load %arg2[%c5, %c0_19] : memref<32x128xf32, #tpu.memory_space<vmem>>, vector<1x16xf32>
    %36 = vector.broadcast %35 : vector<1x16xf32> to vector<16x16xf32>
    %37 = arith.addf %34, %36 : vector<16x16xf32>
    %c0_20 = arith.constant 0 : index
    %c0_21 = arith.constant 0 : index
    %c0_22 = arith.constant 0 : index
    %38 = vector.load %arg5[%c0_20, %c0_21, %c0_22] : memref<4x32x16xf32, #tpu.memory_space<vmem>>, vector<1x32x16xf32>
    %39 = vector.shape_cast %38 : vector<1x32x16xf32> to vector<32x16xf32>
    %cst_23 = arith.constant dense<0.000000e+00> : vector<16x16xf32>
    %40 = tpu.matmul %25, %39, %cst_23 {dimension_numbers = #tpu.dot_dimension_numbers<[1], [0], [0], [1], [0, 0, 1, 1], [], []>} : vector<16x32xf32>, vector<32x16xf32>, vector<16x16xf32> -> vector<16x16xf32>
    %c7 = arith.constant 7 : index
    %c0_24 = arith.constant 0 : index
    %41 = vector.load %arg2[%c7, %c0_24] : memref<32x128xf32, #tpu.memory_space<vmem>>, vector<1x16xf32>
    %42 = vector.broadcast %41 : vector<1x16xf32> to vector<16x16xf32>
    %43 = arith.addf %40, %42 : vector<16x16xf32>
    %cst_25 = arith.constant dense<0.000000e+00> : vector<16x16xf32>
    %44 = tpu.matmul %31, %37, %cst_25 {dimension_numbers = #tpu.dot_dimension_numbers<[1], [1], [0], [0], [0, 0, 1, 0], [], []>} : vector<16x16xf32>, vector<16x16xf32>, vector<16x16xf32> -> vector<16x16xf32>
    %cst_26 = arith.constant 2.500000e-01 : f32
    %45 = vector.broadcast %cst_26 : f32 to vector<16x16xf32>
    %46 = arith.mulf %44, %45 : vector<16x16xf32>
    %47 = arith.addf %46, %1 : vector<16x16xf32>
    %cst_27 = arith.constant dense<0xFF800000> : vector<16xf32>
    %48 = vector.multi_reduction <maximumf>, %47, %cst_27 [1] : vector<16x16xf32> to vector<16xf32>
    %49 = vector.shape_cast %48 : vector<16xf32> to vector<16x1xf32>
    %50 = vector.broadcast %49 : vector<16x1xf32> to vector<16x16xf32>
    %51 = arith.subf %47, %50 : vector<16x16xf32>
    %52 = math.exp %51 : vector<16x16xf32>
    %cst_28 = arith.constant dense<0.000000e+00> : vector<16xf32>
    %53 = vector.multi_reduction <add>, %52, %cst_28 [1] : vector<16x16xf32> to vector<16xf32>
    %54 = vector.shape_cast %53 : vector<16xf32> to vector<16x1xf32>
    %55 = tpu.reciprocal %54 {approx = true} : vector<16x1xf32> -> vector<16x1xf32>
    %56 = vector.broadcast %55 : vector<16x1xf32> to vector<16x16xf32>
    %57 = arith.mulf %52, %56 : vector<16x16xf32>
    %cst_29 = arith.constant dense<0.000000e+00> : vector<16x16xf32>
    %58 = tpu.matmul %57, %43, %cst_29 {dimension_numbers = #tpu.dot_dimension_numbers<[1], [0], [0], [1], [0, 0, 1, 1], [], []>} : vector<16x16xf32>, vector<16x16xf32>, vector<16x16xf32> -> vector<16x16xf32>
    %c0_30 = arith.constant 0 : index
    %c0_31 = arith.constant 0 : index
    %c0_32 = arith.constant 0 : index
    %59 = vector.load %arg6[%c0_30, %c0_31, %c0_32] : memref<4x16x32xf32, #tpu.memory_space<vmem>>, vector<1x16x32xf32>
    %60 = vector.shape_cast %59 : vector<1x16x32xf32> to vector<16x32xf32>
    %cst_33 = arith.constant dense<0.000000e+00> : vector<16x32xf32>
    %61 = tpu.matmul %58, %60, %cst_33 {dimension_numbers = #tpu.dot_dimension_numbers<[1], [0], [0], [1], [0, 0, 1, 1], [], []>} : vector<16x16xf32>, vector<16x32xf32>, vector<16x32xf32> -> vector<16x32xf32>
    %c1_34 = arith.constant 1 : index
    %c0_35 = arith.constant 0 : index
    %c0_36 = arith.constant 0 : index
    %62 = vector.load %arg3[%c1_34, %c0_35, %c0_36] : memref<4x32x16xf32, #tpu.memory_space<vmem>>, vector<1x32x16xf32>
    %63 = vector.shape_cast %62 : vector<1x32x16xf32> to vector<32x16xf32>
    %cst_37 = arith.constant dense<0.000000e+00> : vector<16x16xf32>
    %64 = tpu.matmul %25, %63, %cst_37 {dimension_numbers = #tpu.dot_dimension_numbers<[1], [0], [0], [1], [0, 0, 1, 1], [], []>} : vector<16x32xf32>, vector<32x16xf32>, vector<16x16xf32> -> vector<16x16xf32>
    %c4 = arith.constant 4 : index
    %c0_38 = arith.constant 0 : index
    %65 = vector.load %arg2[%c4, %c0_38] : memref<32x128xf32, #tpu.memory_space<vmem>>, vector<1x16xf32>
    %66 = vector.broadcast %65 : vector<1x16xf32> to vector<16x16xf32>
    %67 = arith.addf %64, %66 : vector<16x16xf32>
    %c1_39 = arith.constant 1 : index
    %c0_40 = arith.constant 0 : index
    %c0_41 = arith.constant 0 : index
    %68 = vector.load %arg4[%c1_39, %c0_40, %c0_41] : memref<4x32x16xf32, #tpu.memory_space<vmem>>, vector<1x32x16xf32>
    %69 = vector.shape_cast %68 : vector<1x32x16xf32> to vector<32x16xf32>
    %cst_42 = arith.constant dense<0.000000e+00> : vector<16x16xf32>
    %70 = tpu.matmul %25, %69, %cst_42 {dimension_numbers = #tpu.dot_dimension_numbers<[1], [0], [0], [1], [0, 0, 1, 1], [], []>} : vector<16x32xf32>, vector<32x16xf32>, vector<16x16xf32> -> vector<16x16xf32>
    %c6 = arith.constant 6 : index
    %c0_43 = arith.constant 0 : index
    %71 = vector.load %arg2[%c6, %c0_43] : memref<32x128xf32, #tpu.memory_space<vmem>>, vector<1x16xf32>
    %72 = vector.broadcast %71 : vector<1x16xf32> to vector<16x16xf32>
    %73 = arith.addf %70, %72 : vector<16x16xf32>
    %c1_44 = arith.constant 1 : index
    %c0_45 = arith.constant 0 : index
    %c0_46 = arith.constant 0 : index
    %74 = vector.load %arg5[%c1_44, %c0_45, %c0_46] : memref<4x32x16xf32, #tpu.memory_space<vmem>>, vector<1x32x16xf32>
    %75 = vector.shape_cast %74 : vector<1x32x16xf32> to vector<32x16xf32>
    %cst_47 = arith.constant dense<0.000000e+00> : vector<16x16xf32>
    %76 = tpu.matmul %25, %75, %cst_47 {dimension_numbers = #tpu.dot_dimension_numbers<[1], [0], [0], [1], [0, 0, 1, 1], [], []>} : vector<16x32xf32>, vector<32x16xf32>, vector<16x16xf32> -> vector<16x16xf32>
    %c8 = arith.constant 8 : index
    %c0_48 = arith.constant 0 : index
    %77 = vector.load %arg2[%c8, %c0_48] : memref<32x128xf32, #tpu.memory_space<vmem>>, vector<1x16xf32>
    %78 = vector.broadcast %77 : vector<1x16xf32> to vector<16x16xf32>
    %79 = arith.addf %76, %78 : vector<16x16xf32>
    %cst_49 = arith.constant dense<0.000000e+00> : vector<16x16xf32>
    %80 = tpu.matmul %67, %73, %cst_49 {dimension_numbers = #tpu.dot_dimension_numbers<[1], [1], [0], [0], [0, 0, 1, 0], [], []>} : vector<16x16xf32>, vector<16x16xf32>, vector<16x16xf32> -> vector<16x16xf32>
    %cst_50 = arith.constant 2.500000e-01 : f32
    %81 = vector.broadcast %cst_50 : f32 to vector<16x16xf32>
    %82 = arith.mulf %80, %81 : vector<16x16xf32>
    %83 = arith.addf %82, %1 : vector<16x16xf32>
    %cst_51 = arith.constant dense<0xFF800000> : vector<16xf32>
    %84 = vector.multi_reduction <maximumf>, %83, %cst_51 [1] : vector<16x16xf32> to vector<16xf32>
    %85 = vector.shape_cast %84 : vector<16xf32> to vector<16x1xf32>
    %86 = vector.broadcast %85 : vector<16x1xf32> to vector<16x16xf32>
    %87 = arith.subf %83, %86 : vector<16x16xf32>
    %88 = math.exp %87 : vector<16x16xf32>
    %cst_52 = arith.constant dense<0.000000e+00> : vector<16xf32>
    %89 = vector.multi_reduction <add>, %88, %cst_52 [1] : vector<16x16xf32> to vector<16xf32>
    %90 = vector.shape_cast %89 : vector<16xf32> to vector<16x1xf32>
    %91 = tpu.reciprocal %90 {approx = true} : vector<16x1xf32> -> vector<16x1xf32>
    %92 = vector.broadcast %91 : vector<16x1xf32> to vector<16x16xf32>
    %93 = arith.mulf %88, %92 : vector<16x16xf32>
    %cst_53 = arith.constant dense<0.000000e+00> : vector<16x16xf32>
    %94 = tpu.matmul %93, %79, %cst_53 {dimension_numbers = #tpu.dot_dimension_numbers<[1], [0], [0], [1], [0, 0, 1, 1], [], []>} : vector<16x16xf32>, vector<16x16xf32>, vector<16x16xf32> -> vector<16x16xf32>
    %c1_54 = arith.constant 1 : index
    %c0_55 = arith.constant 0 : index
    %c0_56 = arith.constant 0 : index
    %95 = vector.load %arg6[%c1_54, %c0_55, %c0_56] : memref<4x16x32xf32, #tpu.memory_space<vmem>>, vector<1x16x32xf32>
    %96 = vector.shape_cast %95 : vector<1x16x32xf32> to vector<16x32xf32>
    %cst_57 = arith.constant dense<0.000000e+00> : vector<16x32xf32>
    %97 = tpu.matmul %94, %96, %cst_57 {dimension_numbers = #tpu.dot_dimension_numbers<[1], [0], [0], [1], [0, 0, 1, 1], [], []>} : vector<16x16xf32>, vector<16x32xf32>, vector<16x32xf32> -> vector<16x32xf32>
    %98 = arith.addf %61, %97 : vector<16x32xf32>
    %c9 = arith.constant 9 : index
    %c0_58 = arith.constant 0 : index
    %99 = vector.load %arg2[%c9, %c0_58] : memref<32x128xf32, #tpu.memory_space<vmem>>, vector<1x32xf32>
    %100 = vector.broadcast %99 : vector<1x32xf32> to vector<16x32xf32>
    %101 = arith.addf %98, %100 : vector<16x32xf32>
    %102 = arith.addf %101, %25 : vector<16x32xf32>
    %c10 = arith.constant 10 : index
    %c0_59 = arith.constant 0 : index
    %103 = vector.load %arg2[%c10, %c0_59] : memref<32x128xf32, #tpu.memory_space<vmem>>, vector<1x32xf32>
    %c11 = arith.constant 11 : index
    %c0_60 = arith.constant 0 : index
    %104 = vector.load %arg2[%c11, %c0_60] : memref<32x128xf32, #tpu.memory_space<vmem>>, vector<1x32xf32>
    %cst_61 = arith.constant dense<0.000000e+00> : vector<16xf32>
    %105 = vector.multi_reduction <add>, %102, %cst_61 [1] : vector<16x32xf32> to vector<16xf32>
    %106 = vector.shape_cast %105 : vector<16xf32> to vector<16x1xf32>
    %cst_62 = arith.constant 3.200000e+01 : f32
    %107 = vector.broadcast %cst_62 : f32 to vector<16x1xf32>
    %108 = arith.divf %106, %107 : vector<16x1xf32>
    %109 = vector.broadcast %108 : vector<16x1xf32> to vector<16x32xf32>
    %110 = arith.subf %102, %109 : vector<16x32xf32>
    %111 = arith.mulf %110, %110 : vector<16x32xf32>
    %cst_63 = arith.constant dense<0.000000e+00> : vector<16xf32>
    %112 = vector.multi_reduction <add>, %111, %cst_63 [1] : vector<16x32xf32> to vector<16xf32>
    %113 = vector.shape_cast %112 : vector<16xf32> to vector<16x1xf32>
    %cst_64 = arith.constant 3.200000e+01 : f32
    %114 = vector.broadcast %cst_64 : f32 to vector<16x1xf32>
    %115 = arith.divf %113, %114 : vector<16x1xf32>
    %116 = vector.broadcast %108 : vector<16x1xf32> to vector<16x32xf32>
    %117 = arith.subf %102, %116 : vector<16x32xf32>
    %cst_65 = arith.constant 9.99999996E-13 : f32
    %118 = vector.broadcast %cst_65 : f32 to vector<16x1xf32>
    %119 = arith.addf %115, %118 : vector<16x1xf32>
    %120 = math.rsqrt %119 : vector<16x1xf32>
    %121 = vector.broadcast %120 : vector<16x1xf32> to vector<16x32xf32>
    %122 = arith.mulf %117, %121 : vector<16x32xf32>
    %123 = vector.broadcast %103 : vector<1x32xf32> to vector<16x32xf32>
    %124 = arith.mulf %122, %123 : vector<16x32xf32>
    %125 = vector.broadcast %104 : vector<1x32xf32> to vector<16x32xf32>
    %126 = arith.addf %124, %125 : vector<16x32xf32>
    %c0_66 = arith.constant 0 : index
    %c0_67 = arith.constant 0 : index
    %c0_68 = arith.constant 0 : index
    %127 = vector.load %arg7[%c0_66, %c0_67, %c0_68] : memref<2x32x64xf32, #tpu.memory_space<vmem>>, vector<1x32x64xf32>
    %128 = vector.shape_cast %127 : vector<1x32x64xf32> to vector<32x64xf32>
    %cst_69 = arith.constant dense<0.000000e+00> : vector<16x64xf32>
    %129 = tpu.matmul %126, %128, %cst_69 {dimension_numbers = #tpu.dot_dimension_numbers<[1], [0], [0], [1], [0, 0, 1, 1], [], []>} : vector<16x32xf32>, vector<32x64xf32>, vector<16x64xf32> -> vector<16x64xf32>
    %c12 = arith.constant 12 : index
    %c0_70 = arith.constant 0 : index
    %130 = vector.load %arg2[%c12, %c0_70] : memref<32x128xf32, #tpu.memory_space<vmem>>, vector<1x64xf32>
    %131 = vector.broadcast %130 : vector<1x64xf32> to vector<16x64xf32>
    %132 = arith.addf %129, %131 : vector<16x64xf32>
    %cst_71 = arith.constant 5.000000e-01 : f32
    %133 = vector.broadcast %cst_71 : f32 to vector<16x64xf32>
    %134 = arith.mulf %133, %132 : vector<16x64xf32>
    %cst_72 = arith.constant 4.471500e-02 : f32
    %135 = vector.broadcast %cst_72 : f32 to vector<16x64xf32>
    %136 = arith.mulf %135, %132 : vector<16x64xf32>
    %137 = arith.mulf %136, %132 : vector<16x64xf32>
    %138 = arith.mulf %137, %132 : vector<16x64xf32>
    %139 = arith.addf %132, %138 : vector<16x64xf32>
    %cst_73 = arith.constant 0.797884583 : f32
    %140 = vector.broadcast %cst_73 : f32 to vector<16x64xf32>
    %141 = arith.mulf %140, %139 : vector<16x64xf32>
    %142 = math.tanh %141 : vector<16x64xf32>
    %cst_74 = arith.constant 1.000000e+00 : f32
    %143 = vector.broadcast %cst_74 : f32 to vector<16x64xf32>
    %144 = arith.addf %143, %142 : vector<16x64xf32>
    %145 = arith.mulf %134, %144 : vector<16x64xf32>
    %c0_75 = arith.constant 0 : index
    %c0_76 = arith.constant 0 : index
    %c0_77 = arith.constant 0 : index
    %146 = vector.load %arg8[%c0_75, %c0_76, %c0_77] : memref<2x64x32xf32, #tpu.memory_space<vmem>>, vector<1x64x32xf32>
    %147 = vector.shape_cast %146 : vector<1x64x32xf32> to vector<64x32xf32>
    %cst_78 = arith.constant dense<0.000000e+00> : vector<16x32xf32>
    %148 = tpu.matmul %145, %147, %cst_78 {dimension_numbers = #tpu.dot_dimension_numbers<[1], [0], [0], [1], [0, 0, 1, 1], [], []>} : vector<16x64xf32>, vector<64x32xf32>, vector<16x32xf32> -> vector<16x32xf32>
    %c13 = arith.constant 13 : index
    %c0_79 = arith.constant 0 : index
    %149 = vector.load %arg2[%c13, %c0_79] : memref<32x128xf32, #tpu.memory_space<vmem>>, vector<1x32xf32>
    %150 = vector.broadcast %149 : vector<1x32xf32> to vector<16x32xf32>
    %151 = arith.addf %148, %150 : vector<16x32xf32>
    %152 = arith.addf %151, %126 : vector<16x32xf32>
    %c14 = arith.constant 14 : index
    %c0_80 = arith.constant 0 : index
    %153 = vector.load %arg2[%c14, %c0_80] : memref<32x128xf32, #tpu.memory_space<vmem>>, vector<1x32xf32>
    %c15 = arith.constant 15 : index
    %c0_81 = arith.constant 0 : index
    %154 = vector.load %arg2[%c15, %c0_81] : memref<32x128xf32, #tpu.memory_space<vmem>>, vector<1x32xf32>
    %cst_82 = arith.constant dense<0.000000e+00> : vector<16xf32>
    %155 = vector.multi_reduction <add>, %152, %cst_82 [1] : vector<16x32xf32> to vector<16xf32>
    %156 = vector.shape_cast %155 : vector<16xf32> to vector<16x1xf32>
    %cst_83 = arith.constant 3.200000e+01 : f32
    %157 = vector.broadcast %cst_83 : f32 to vector<16x1xf32>
    %158 = arith.divf %156, %157 : vector<16x1xf32>
    %159 = vector.broadcast %158 : vector<16x1xf32> to vector<16x32xf32>
    %160 = arith.subf %152, %159 : vector<16x32xf32>
    %161 = arith.mulf %160, %160 : vector<16x32xf32>
    %cst_84 = arith.constant dense<0.000000e+00> : vector<16xf32>
    %162 = vector.multi_reduction <add>, %161, %cst_84 [1] : vector<16x32xf32> to vector<16xf32>
    %163 = vector.shape_cast %162 : vector<16xf32> to vector<16x1xf32>
    %cst_85 = arith.constant 3.200000e+01 : f32
    %164 = vector.broadcast %cst_85 : f32 to vector<16x1xf32>
    %165 = arith.divf %163, %164 : vector<16x1xf32>
    %166 = vector.broadcast %158 : vector<16x1xf32> to vector<16x32xf32>
    %167 = arith.subf %152, %166 : vector<16x32xf32>
    %cst_86 = arith.constant 9.99999996E-13 : f32
    %168 = vector.broadcast %cst_86 : f32 to vector<16x1xf32>
    %169 = arith.addf %165, %168 : vector<16x1xf32>
    %170 = math.rsqrt %169 : vector<16x1xf32>
    %171 = vector.broadcast %170 : vector<16x1xf32> to vector<16x32xf32>
    %172 = arith.mulf %167, %171 : vector<16x32xf32>
    %173 = vector.broadcast %153 : vector<1x32xf32> to vector<16x32xf32>
    %174 = arith.mulf %172, %173 : vector<16x32xf32>
    %175 = vector.broadcast %154 : vector<1x32xf32> to vector<16x32xf32>
    %176 = arith.addf %174, %175 : vector<16x32xf32>
    %c2 = arith.constant 2 : index
    %c0_87 = arith.constant 0 : index
    %c0_88 = arith.constant 0 : index
    %177 = vector.load %arg3[%c2, %c0_87, %c0_88] : memref<4x32x16xf32, #tpu.memory_space<vmem>>, vector<1x32x16xf32>
    %178 = vector.shape_cast %177 : vector<1x32x16xf32> to vector<32x16xf32>
    %cst_89 = arith.constant dense<0.000000e+00> : vector<16x16xf32>
    %179 = tpu.matmul %176, %178, %cst_89 {dimension_numbers = #tpu.dot_dimension_numbers<[1], [0], [0], [1], [0, 0, 1, 1], [], []>} : vector<16x32xf32>, vector<32x16xf32>, vector<16x16xf32> -> vector<16x16xf32>
    %c16 = arith.constant 16 : index
    %c0_90 = arith.constant 0 : index
    %180 = vector.load %arg2[%c16, %c0_90] : memref<32x128xf32, #tpu.memory_space<vmem>>, vector<1x16xf32>
    %181 = vector.broadcast %180 : vector<1x16xf32> to vector<16x16xf32>
    %182 = arith.addf %179, %181 : vector<16x16xf32>
    %c2_91 = arith.constant 2 : index
    %c0_92 = arith.constant 0 : index
    %c0_93 = arith.constant 0 : index
    %183 = vector.load %arg4[%c2_91, %c0_92, %c0_93] : memref<4x32x16xf32, #tpu.memory_space<vmem>>, vector<1x32x16xf32>
    %184 = vector.shape_cast %183 : vector<1x32x16xf32> to vector<32x16xf32>
    %cst_94 = arith.constant dense<0.000000e+00> : vector<16x16xf32>
    %185 = tpu.matmul %176, %184, %cst_94 {dimension_numbers = #tpu.dot_dimension_numbers<[1], [0], [0], [1], [0, 0, 1, 1], [], []>} : vector<16x32xf32>, vector<32x16xf32>, vector<16x16xf32> -> vector<16x16xf32>
    %c18 = arith.constant 18 : index
    %c0_95 = arith.constant 0 : index
    %186 = vector.load %arg2[%c18, %c0_95] : memref<32x128xf32, #tpu.memory_space<vmem>>, vector<1x16xf32>
    %187 = vector.broadcast %186 : vector<1x16xf32> to vector<16x16xf32>
    %188 = arith.addf %185, %187 : vector<16x16xf32>
    %c2_96 = arith.constant 2 : index
    %c0_97 = arith.constant 0 : index
    %c0_98 = arith.constant 0 : index
    %189 = vector.load %arg5[%c2_96, %c0_97, %c0_98] : memref<4x32x16xf32, #tpu.memory_space<vmem>>, vector<1x32x16xf32>
    %190 = vector.shape_cast %189 : vector<1x32x16xf32> to vector<32x16xf32>
    %cst_99 = arith.constant dense<0.000000e+00> : vector<16x16xf32>
    %191 = tpu.matmul %176, %190, %cst_99 {dimension_numbers = #tpu.dot_dimension_numbers<[1], [0], [0], [1], [0, 0, 1, 1], [], []>} : vector<16x32xf32>, vector<32x16xf32>, vector<16x16xf32> -> vector<16x16xf32>
    %c20 = arith.constant 20 : index
    %c0_100 = arith.constant 0 : index
    %192 = vector.load %arg2[%c20, %c0_100] : memref<32x128xf32, #tpu.memory_space<vmem>>, vector<1x16xf32>
    %193 = vector.broadcast %192 : vector<1x16xf32> to vector<16x16xf32>
    %194 = arith.addf %191, %193 : vector<16x16xf32>
    %cst_101 = arith.constant dense<0.000000e+00> : vector<16x16xf32>
    %195 = tpu.matmul %182, %188, %cst_101 {dimension_numbers = #tpu.dot_dimension_numbers<[1], [1], [0], [0], [0, 0, 1, 0], [], []>} : vector<16x16xf32>, vector<16x16xf32>, vector<16x16xf32> -> vector<16x16xf32>
    %cst_102 = arith.constant 2.500000e-01 : f32
    %196 = vector.broadcast %cst_102 : f32 to vector<16x16xf32>
    %197 = arith.mulf %195, %196 : vector<16x16xf32>
    %198 = arith.addf %197, %1 : vector<16x16xf32>
    %cst_103 = arith.constant dense<0xFF800000> : vector<16xf32>
    %199 = vector.multi_reduction <maximumf>, %198, %cst_103 [1] : vector<16x16xf32> to vector<16xf32>
    %200 = vector.shape_cast %199 : vector<16xf32> to vector<16x1xf32>
    %201 = vector.broadcast %200 : vector<16x1xf32> to vector<16x16xf32>
    %202 = arith.subf %198, %201 : vector<16x16xf32>
    %203 = math.exp %202 : vector<16x16xf32>
    %cst_104 = arith.constant dense<0.000000e+00> : vector<16xf32>
    %204 = vector.multi_reduction <add>, %203, %cst_104 [1] : vector<16x16xf32> to vector<16xf32>
    %205 = vector.shape_cast %204 : vector<16xf32> to vector<16x1xf32>
    %206 = tpu.reciprocal %205 {approx = true} : vector<16x1xf32> -> vector<16x1xf32>
    %207 = vector.broadcast %206 : vector<16x1xf32> to vector<16x16xf32>
    %208 = arith.mulf %203, %207 : vector<16x16xf32>
    %cst_105 = arith.constant dense<0.000000e+00> : vector<16x16xf32>
    %209 = tpu.matmul %208, %194, %cst_105 {dimension_numbers = #tpu.dot_dimension_numbers<[1], [0], [0], [1], [0, 0, 1, 1], [], []>} : vector<16x16xf32>, vector<16x16xf32>, vector<16x16xf32> -> vector<16x16xf32>
    %c2_106 = arith.constant 2 : index
    %c0_107 = arith.constant 0 : index
    %c0_108 = arith.constant 0 : index
    %210 = vector.load %arg6[%c2_106, %c0_107, %c0_108] : memref<4x16x32xf32, #tpu.memory_space<vmem>>, vector<1x16x32xf32>
    %211 = vector.shape_cast %210 : vector<1x16x32xf32> to vector<16x32xf32>
    %cst_109 = arith.constant dense<0.000000e+00> : vector<16x32xf32>
    %212 = tpu.matmul %209, %211, %cst_109 {dimension_numbers = #tpu.dot_dimension_numbers<[1], [0], [0], [1], [0, 0, 1, 1], [], []>} : vector<16x16xf32>, vector<16x32xf32>, vector<16x32xf32> -> vector<16x32xf32>
    %c3_110 = arith.constant 3 : index
    %c0_111 = arith.constant 0 : index
    %c0_112 = arith.constant 0 : index
    %213 = vector.load %arg3[%c3_110, %c0_111, %c0_112] : memref<4x32x16xf32, #tpu.memory_space<vmem>>, vector<1x32x16xf32>
    %214 = vector.shape_cast %213 : vector<1x32x16xf32> to vector<32x16xf32>
    %cst_113 = arith.constant dense<0.000000e+00> : vector<16x16xf32>
    %215 = tpu.matmul %176, %214, %cst_113 {dimension_numbers = #tpu.dot_dimension_numbers<[1], [0], [0], [1], [0, 0, 1, 1], [], []>} : vector<16x32xf32>, vector<32x16xf32>, vector<16x16xf32> -> vector<16x16xf32>
    %c17 = arith.constant 17 : index
    %c0_114 = arith.constant 0 : index
    %216 = vector.load %arg2[%c17, %c0_114] : memref<32x128xf32, #tpu.memory_space<vmem>>, vector<1x16xf32>
    %217 = vector.broadcast %216 : vector<1x16xf32> to vector<16x16xf32>
    %218 = arith.addf %215, %217 : vector<16x16xf32>
    %c3_115 = arith.constant 3 : index
    %c0_116 = arith.constant 0 : index
    %c0_117 = arith.constant 0 : index
    %219 = vector.load %arg4[%c3_115, %c0_116, %c0_117] : memref<4x32x16xf32, #tpu.memory_space<vmem>>, vector<1x32x16xf32>
    %220 = vector.shape_cast %219 : vector<1x32x16xf32> to vector<32x16xf32>
    %cst_118 = arith.constant dense<0.000000e+00> : vector<16x16xf32>
    %221 = tpu.matmul %176, %220, %cst_118 {dimension_numbers = #tpu.dot_dimension_numbers<[1], [0], [0], [1], [0, 0, 1, 1], [], []>} : vector<16x32xf32>, vector<32x16xf32>, vector<16x16xf32> -> vector<16x16xf32>
    %c19 = arith.constant 19 : index
    %c0_119 = arith.constant 0 : index
    %222 = vector.load %arg2[%c19, %c0_119] : memref<32x128xf32, #tpu.memory_space<vmem>>, vector<1x16xf32>
    %223 = vector.broadcast %222 : vector<1x16xf32> to vector<16x16xf32>
    %224 = arith.addf %221, %223 : vector<16x16xf32>
    %c3_120 = arith.constant 3 : index
    %c0_121 = arith.constant 0 : index
    %c0_122 = arith.constant 0 : index
    %225 = vector.load %arg5[%c3_120, %c0_121, %c0_122] : memref<4x32x16xf32, #tpu.memory_space<vmem>>, vector<1x32x16xf32>
    %226 = vector.shape_cast %225 : vector<1x32x16xf32> to vector<32x16xf32>
    %cst_123 = arith.constant dense<0.000000e+00> : vector<16x16xf32>
    %227 = tpu.matmul %176, %226, %cst_123 {dimension_numbers = #tpu.dot_dimension_numbers<[1], [0], [0], [1], [0, 0, 1, 1], [], []>} : vector<16x32xf32>, vector<32x16xf32>, vector<16x16xf32> -> vector<16x16xf32>
    %c21 = arith.constant 21 : index
    %c0_124 = arith.constant 0 : index
    %228 = vector.load %arg2[%c21, %c0_124] : memref<32x128xf32, #tpu.memory_space<vmem>>, vector<1x16xf32>
    %229 = vector.broadcast %228 : vector<1x16xf32> to vector<16x16xf32>
    %230 = arith.addf %227, %229 : vector<16x16xf32>
    %cst_125 = arith.constant dense<0.000000e+00> : vector<16x16xf32>
    %231 = tpu.matmul %218, %224, %cst_125 {dimension_numbers = #tpu.dot_dimension_numbers<[1], [1], [0], [0], [0, 0, 1, 0], [], []>} : vector<16x16xf32>, vector<16x16xf32>, vector<16x16xf32> -> vector<16x16xf32>
    %cst_126 = arith.constant 2.500000e-01 : f32
    %232 = vector.broadcast %cst_126 : f32 to vector<16x16xf32>
    %233 = arith.mulf %231, %232 : vector<16x16xf32>
    %234 = arith.addf %233, %1 : vector<16x16xf32>
    %cst_127 = arith.constant dense<0xFF800000> : vector<16xf32>
    %235 = vector.multi_reduction <maximumf>, %234, %cst_127 [1] : vector<16x16xf32> to vector<16xf32>
    %236 = vector.shape_cast %235 : vector<16xf32> to vector<16x1xf32>
    %237 = vector.broadcast %236 : vector<16x1xf32> to vector<16x16xf32>
    %238 = arith.subf %234, %237 : vector<16x16xf32>
    %239 = math.exp %238 : vector<16x16xf32>
    %cst_128 = arith.constant dense<0.000000e+00> : vector<16xf32>
    %240 = vector.multi_reduction <add>, %239, %cst_128 [1] : vector<16x16xf32> to vector<16xf32>
    %241 = vector.shape_cast %240 : vector<16xf32> to vector<16x1xf32>
    %242 = tpu.reciprocal %241 {approx = true} : vector<16x1xf32> -> vector<16x1xf32>
    %243 = vector.broadcast %242 : vector<16x1xf32> to vector<16x16xf32>
    %244 = arith.mulf %239, %243 : vector<16x16xf32>
    %cst_129 = arith.constant dense<0.000000e+00> : vector<16x16xf32>
    %245 = tpu.matmul %244, %230, %cst_129 {dimension_numbers = #tpu.dot_dimension_numbers<[1], [0], [0], [1], [0, 0, 1, 1], [], []>} : vector<16x16xf32>, vector<16x16xf32>, vector<16x16xf32> -> vector<16x16xf32>
    %c3_130 = arith.constant 3 : index
    %c0_131 = arith.constant 0 : index
    %c0_132 = arith.constant 0 : index
    %246 = vector.load %arg6[%c3_130, %c0_131, %c0_132] : memref<4x16x32xf32, #tpu.memory_space<vmem>>, vector<1x16x32xf32>
    %247 = vector.shape_cast %246 : vector<1x16x32xf32> to vector<16x32xf32>
    %cst_133 = arith.constant dense<0.000000e+00> : vector<16x32xf32>
    %248 = tpu.matmul %245, %247, %cst_133 {dimension_numbers = #tpu.dot_dimension_numbers<[1], [0], [0], [1], [0, 0, 1, 1], [], []>} : vector<16x16xf32>, vector<16x32xf32>, vector<16x32xf32> -> vector<16x32xf32>
    %249 = arith.addf %212, %248 : vector<16x32xf32>
    %c22 = arith.constant 22 : index
    %c0_134 = arith.constant 0 : index
    %250 = vector.load %arg2[%c22, %c0_134] : memref<32x128xf32, #tpu.memory_space<vmem>>, vector<1x32xf32>
    %251 = vector.broadcast %250 : vector<1x32xf32> to vector<16x32xf32>
    %252 = arith.addf %249, %251 : vector<16x32xf32>
    %253 = arith.addf %252, %176 : vector<16x32xf32>
    %c23 = arith.constant 23 : index
    %c0_135 = arith.constant 0 : index
    %254 = vector.load %arg2[%c23, %c0_135] : memref<32x128xf32, #tpu.memory_space<vmem>>, vector<1x32xf32>
    %c24 = arith.constant 24 : index
    %c0_136 = arith.constant 0 : index
    %255 = vector.load %arg2[%c24, %c0_136] : memref<32x128xf32, #tpu.memory_space<vmem>>, vector<1x32xf32>
    %cst_137 = arith.constant dense<0.000000e+00> : vector<16xf32>
    %256 = vector.multi_reduction <add>, %253, %cst_137 [1] : vector<16x32xf32> to vector<16xf32>
    %257 = vector.shape_cast %256 : vector<16xf32> to vector<16x1xf32>
    %cst_138 = arith.constant 3.200000e+01 : f32
    %258 = vector.broadcast %cst_138 : f32 to vector<16x1xf32>
    %259 = arith.divf %257, %258 : vector<16x1xf32>
    %260 = vector.broadcast %259 : vector<16x1xf32> to vector<16x32xf32>
    %261 = arith.subf %253, %260 : vector<16x32xf32>
    %262 = arith.mulf %261, %261 : vector<16x32xf32>
    %cst_139 = arith.constant dense<0.000000e+00> : vector<16xf32>
    %263 = vector.multi_reduction <add>, %262, %cst_139 [1] : vector<16x32xf32> to vector<16xf32>
    %264 = vector.shape_cast %263 : vector<16xf32> to vector<16x1xf32>
    %cst_140 = arith.constant 3.200000e+01 : f32
    %265 = vector.broadcast %cst_140 : f32 to vector<16x1xf32>
    %266 = arith.divf %264, %265 : vector<16x1xf32>
    %267 = vector.broadcast %259 : vector<16x1xf32> to vector<16x32xf32>
    %268 = arith.subf %253, %267 : vector<16x32xf32>
    %cst_141 = arith.constant 9.99999996E-13 : f32
    %269 = vector.broadcast %cst_141 : f32 to vector<16x1xf32>
    %270 = arith.addf %266, %269 : vector<16x1xf32>
    %271 = math.rsqrt %270 : vector<16x1xf32>
    %272 = vector.broadcast %271 : vector<16x1xf32> to vector<16x32xf32>
    %273 = arith.mulf %268, %272 : vector<16x32xf32>
    %274 = vector.broadcast %254 : vector<1x32xf32> to vector<16x32xf32>
    %275 = arith.mulf %273, %274 : vector<16x32xf32>
    %276 = vector.broadcast %255 : vector<1x32xf32> to vector<16x32xf32>
    %277 = arith.addf %275, %276 : vector<16x32xf32>
    %c1_142 = arith.constant 1 : index
    %c0_143 = arith.constant 0 : index
    %c0_144 = arith.constant 0 : index
    %278 = vector.load %arg7[%c1_142, %c0_143, %c0_144] : memref<2x32x64xf32, #tpu.memory_space<vmem>>, vector<1x32x64xf32>
    %279 = vector.shape_cast %278 : vector<1x32x64xf32> to vector<32x64xf32>
    %cst_145 = arith.constant dense<0.000000e+00> : vector<16x64xf32>
    %280 = tpu.matmul %277, %279, %cst_145 {dimension_numbers = #tpu.dot_dimension_numbers<[1], [0], [0], [1], [0, 0, 1, 1], [], []>} : vector<16x32xf32>, vector<32x64xf32>, vector<16x64xf32> -> vector<16x64xf32>
    %c25 = arith.constant 25 : index
    %c0_146 = arith.constant 0 : index
    %281 = vector.load %arg2[%c25, %c0_146] : memref<32x128xf32, #tpu.memory_space<vmem>>, vector<1x64xf32>
    %282 = vector.broadcast %281 : vector<1x64xf32> to vector<16x64xf32>
    %283 = arith.addf %280, %282 : vector<16x64xf32>
    %cst_147 = arith.constant 5.000000e-01 : f32
    %284 = vector.broadcast %cst_147 : f32 to vector<16x64xf32>
    %285 = arith.mulf %284, %283 : vector<16x64xf32>
    %cst_148 = arith.constant 4.471500e-02 : f32
    %286 = vector.broadcast %cst_148 : f32 to vector<16x64xf32>
    %287 = arith.mulf %286, %283 : vector<16x64xf32>
    %288 = arith.mulf %287, %283 : vector<16x64xf32>
    %289 = arith.mulf %288, %283 : vector<16x64xf32>
    %290 = arith.addf %283, %289 : vector<16x64xf32>
    %cst_149 = arith.constant 0.797884583 : f32
    %291 = vector.broadcast %cst_149 : f32 to vector<16x64xf32>
    %292 = arith.mulf %291, %290 : vector<16x64xf32>
    %293 = math.tanh %292 : vector<16x64xf32>
    %cst_150 = arith.constant 1.000000e+00 : f32
    %294 = vector.broadcast %cst_150 : f32 to vector<16x64xf32>
    %295 = arith.addf %294, %293 : vector<16x64xf32>
    %296 = arith.mulf %285, %295 : vector<16x64xf32>
    %c1_151 = arith.constant 1 : index
    %c0_152 = arith.constant 0 : index
    %c0_153 = arith.constant 0 : index
    %297 = vector.load %arg8[%c1_151, %c0_152, %c0_153] : memref<2x64x32xf32, #tpu.memory_space<vmem>>, vector<1x64x32xf32>
    %298 = vector.shape_cast %297 : vector<1x64x32xf32> to vector<64x32xf32>
    %cst_154 = arith.constant dense<0.000000e+00> : vector<16x32xf32>
    %299 = tpu.matmul %296, %298, %cst_154 {dimension_numbers = #tpu.dot_dimension_numbers<[1], [0], [0], [1], [0, 0, 1, 1], [], []>} : vector<16x64xf32>, vector<64x32xf32>, vector<16x32xf32> -> vector<16x32xf32>
    %c26 = arith.constant 26 : index
    %c0_155 = arith.constant 0 : index
    %300 = vector.load %arg2[%c26, %c0_155] : memref<32x128xf32, #tpu.memory_space<vmem>>, vector<1x32xf32>
    %301 = vector.broadcast %300 : vector<1x32xf32> to vector<16x32xf32>
    %302 = arith.addf %299, %301 : vector<16x32xf32>
    %303 = arith.addf %302, %277 : vector<16x32xf32>
    %c27 = arith.constant 27 : index
    %c0_156 = arith.constant 0 : index
    %304 = vector.load %arg2[%c27, %c0_156] : memref<32x128xf32, #tpu.memory_space<vmem>>, vector<1x32xf32>
    %c28 = arith.constant 28 : index
    %c0_157 = arith.constant 0 : index
    %305 = vector.load %arg2[%c28, %c0_157] : memref<32x128xf32, #tpu.memory_space<vmem>>, vector<1x32xf32>
    %cst_158 = arith.constant dense<0.000000e+00> : vector<16xf32>
    %306 = vector.multi_reduction <add>, %303, %cst_158 [1] : vector<16x32xf32> to vector<16xf32>
    %307 = vector.shape_cast %306 : vector<16xf32> to vector<16x1xf32>
    %cst_159 = arith.constant 3.200000e+01 : f32
    %308 = vector.broadcast %cst_159 : f32 to vector<16x1xf32>
    %309 = arith.divf %307, %308 : vector<16x1xf32>
    %310 = vector.broadcast %309 : vector<16x1xf32> to vector<16x32xf32>
    %311 = arith.subf %303, %310 : vector<16x32xf32>
    %312 = arith.mulf %311, %311 : vector<16x32xf32>
    %cst_160 = arith.constant dense<0.000000e+00> : vector<16xf32>
    %313 = vector.multi_reduction <add>, %312, %cst_160 [1] : vector<16x32xf32> to vector<16xf32>
    %314 = vector.shape_cast %313 : vector<16xf32> to vector<16x1xf32>
    %cst_161 = arith.constant 3.200000e+01 : f32
    %315 = vector.broadcast %cst_161 : f32 to vector<16x1xf32>
    %316 = arith.divf %314, %315 : vector<16x1xf32>
    %317 = vector.broadcast %309 : vector<16x1xf32> to vector<16x32xf32>
    %318 = arith.subf %303, %317 : vector<16x32xf32>
    %cst_162 = arith.constant 9.99999996E-13 : f32
    %319 = vector.broadcast %cst_162 : f32 to vector<16x1xf32>
    %320 = arith.addf %316, %319 : vector<16x1xf32>
    %321 = math.rsqrt %320 : vector<16x1xf32>
    %322 = vector.broadcast %321 : vector<16x1xf32> to vector<16x32xf32>
    %323 = arith.mulf %318, %322 : vector<16x32xf32>
    %324 = vector.broadcast %304 : vector<1x32xf32> to vector<16x32xf32>
    %325 = arith.mulf %323, %324 : vector<16x32xf32>
    %326 = vector.broadcast %305 : vector<1x32xf32> to vector<16x32xf32>
    %327 = arith.addf %325, %326 : vector<16x32xf32>
    %cst_163 = arith.constant 0.000000e+00 : f32
    %328 = vector.broadcast %cst_163 : f32 to vector<16x96xf32>
    %329 = tpu.concatenate %327, %328 in 1 : vector<16x32xf32>, vector<16x96xf32> -> vector<16x128xf32>
    %c0_164 = arith.constant 0 : index
    %c0_165 = arith.constant 0 : index
    %330 = vector.load %arg10[%c0_164, %c0_165] : memref<16x128xf32, #tpu.memory_space<vmem>>, vector<16x128xf32>
    tpu.vector_store %arg10[%c0_164, %c0_165], %329 {strides = array<i32>} : memref<16x128xf32, #tpu.memory_space<vmem>>, vector<16x128xf32>,
    %331 = vector.extract_strided_slice %327 {offsets = [0, 0], sizes = [1, 32], strides = [1, 1]} : vector<16x32xf32> to vector<1x32xf32>
    %332 = vector.extract_strided_slice %327 {offsets = [8, 0], sizes = [1, 32], strides = [1, 1]} : vector<16x32xf32> to vector<1x32xf32>
    %333 = tpu.concatenate %331, %332 in 0 : vector<1x32xf32>, vector<1x32xf32> -> vector<2x32xf32>
    %c0_166 = arith.constant 0 : index
    %c0_167 = arith.constant 0 : index
    %334 = vector.load %arg9[%c0_166, %c0_167] : memref<32x32xf32, #tpu.memory_space<vmem>>, vector<32x32xf32>
    %cst_168 = arith.constant dense<0.000000e+00> : vector<2x32xf32>
    %335 = tpu.matmul %333, %334, %cst_168 {dimension_numbers = #tpu.dot_dimension_numbers<[1], [0], [0], [1], [0, 0, 1, 1], [], []>} : vector<2x32xf32>, vector<32x32xf32>, vector<2x32xf32> -> vector<2x32xf32>
    %c2_169 = arith.constant 2 : index
    %c0_170 = arith.constant 0 : index
    %336 = vector.load %arg2[%c2_169, %c0_170] : memref<32x128xf32, #tpu.memory_space<vmem>>, vector<1x32xf32>
    %337 = vector.broadcast %336 : vector<1x32xf32> to vector<2x32xf32>
    %338 = arith.addf %335, %337 : vector<2x32xf32>
    %339 = math.tanh %338 : vector<2x32xf32>
    %cst_171 = arith.constant 0.000000e+00 : f32
    %340 = vector.broadcast %cst_171 : f32 to vector<2x96xf32>
    %341 = tpu.concatenate %339, %340 in 1 : vector<2x32xf32>, vector<2x96xf32> -> vector<2x128xf32>
    %c0_172 = arith.constant 0 : index
    %c0_173 = arith.constant 0 : index
    %342 = vector.load %arg11[%c0_172, %c0_173] : memref<2x128xf32, #tpu.memory_space<vmem>>, vector<2x128xf32>
    tpu.vector_store %arg11[%c0_172, %c0_173], %341 {strides = array<i32>} : memref<2x128xf32, #tpu.memory_space<vmem>>, vector<2x128xf32>,
    return
  }
}

</mosaic_0001>

<bundles_post_ra>
// kernel: bert_forward.1
= control target key start
LH: loop header
LB: loop body
LE: loop exit
PB: predicated region body
PF: predicated region fallthrough
CT: control target
= control target key end

     0   :  { %vm44_vm0 = vcmask 261120   ;;  %s4423_s0 = inlined_call_operand.vmem [shape: f32[16,32], index: 0, kind: input, shape index: {}]   ;;  %s4424_s1 = inlined_call_operand.vmem [shape: f32[16,16], index: 1, kind: input, shape index: {}]   ;;  %s4425_s2 = inlined_call_operand.vmem [shape: f32[32,128], index: 2, kind: input, shape index: {}]   ;;  %s4426_s3 = inlined_call_operand.vmem [shape: f32[4,32,16], index: 3, kind: input, shape index: {}]   ;;  %s4427_s4 = inlined_call_operand.vmem [shape: f32[4,32,16], index: 4, kind: input, shape index: {}]   ;;  %s4428_s5 = inlined_call_operand.vmem [shape: f32[4,32,16], index: 5, kind: input, shape index: {}]   ;;  %s4429_s6 = inlined_call_operand.vmem [shape: f32[4,16,32], index: 6, kind: input, shape index: {}]   ;;  %s4430_s7 = inlined_call_operand.vmem [shape: f32[2,32,64], index: 7, kind: input, shape index: {}]   ;;  %s4431_s8 = inlined_call_operand.vmem [shape: f32[2,64,32], index: 8, kind: input, shape index: {}]   ;;  %s4432_s9 = inlined_call_operand.vmem [shape: f32[32,32], index: 9, kind: input, shape index: {}]   ;;  %s4433_s10 = inlined_call_operand.vmem [shape: f32[16,128], index: 10, kind: output, shape index: {0}]   ;;  %s4434_s11 = inlined_call_operand.hbm [shape: f32[2,128], index: 11, kind: output, shape index: {1}]  }
   0x1   :  { %v38_v0 = vld [vmem:[%s4423_s0] sm:$0xff]  ;;  %v39_v1 = vld [vmem:[%s4423_s0 + $0x8] sm:$0xff] }
   0x2   :  { %17 = vsyncpa [#allocation3], 0  ;;  %v45_v2 = vsel %vm44_vm0, %v38_v0, 0.0  ;;  %v48_v3 = vsel %vm44_vm0, %v39_v1, 0.0  ;;  %v84_v14 = vld [vmem:[%s4426_s3] sm:$0xff]  ;;  %v85_v15 = vld [vmem:[%s4426_s3 + $0x8] sm:$0xff] }
   0x3   :  { %46 = vadd.xlane.f32.xlu0 %v45_v2  ;;  %v3518_v16 = vpack.c.bf16 %v85_v15, %v84_v14  ;;  %v174_v17 = vld [vmem:[%s4427_s4] sm:$0xff]  ;;  %v175_v18 = vld [vmem:[%s4427_s4 + $0x8] sm:$0xff]  ;;  %v86_v20 = vld [vmem:[%s4426_s3 + $0x10] sm:$0xff]  ;;  %vm342_vm1 = vcmask 130048   ;;  %vm1323_vm3 = vcmask 523264   ;;  %vm3819_vm4 = vmmov 0  }
   0x4   :  { %v3526_v19 = vpack.c.bf16 %v175_v18, %v174_v17  ;;  %v87_v21 = vld [vmem:[%s4426_s3 + $0x18] sm:$0xff]  ;;  %v176_v23 = vld [vmem:[%s4427_s4 + $0x10] sm:$0xff]  ;;  %v258_v26 = vld [vmem:[%s4428_s5] sm:$0xff]  ;;  %vm2821_vm5 = vcmask 1040384   ;;  %s3821_s30 = smov [#allocation2]  }
   0x5   :  { %3519 = vmatprep.subr.bf16.mxu0 %v3518_v16  ;;  %v3522_v22 = vpack.c.bf16 %v87_v21, %v86_v20  ;;  %v177_v24 = vld [vmem:[%s4427_s4 + $0x18] sm:$0xff]  ;;  %v259_v27 = vld [vmem:[%s4428_s5 + $0x8] sm:$0xff]  ;;  %v2926_v36 = vld [vmem:[%s4425_s2] ss:$0 sm:$0xff] }
   0x6   :  { %3521 = vmatpush3.bf16.msra.mxu0 %v3518_v16  ;;  %3527 = vmatprep.subr.bf16.mxu1 %v3526_v19  ;;  %v3530_v25 = vpack.c.bf16 %v177_v24, %v176_v23  ;;  %v3534_v28 = vpack.c.bf16 %v259_v27, %v258_v26  ;;  %v2927_v38 = vld [vmem:[%s4425_s2 + $0x1] ss:$0 sm:$0xff]  ;;  %v260_v43 = vld [vmem:[%s4428_s5 + $0x10] sm:$0xff]  ;;  %v261_v44 = vld [vmem:[%s4428_s5 + $0x18] sm:$0xff] }
   0x7   :  { %49 = vadd.xlane.f32.xlu0 %v48_v3  ;;  %3529 = vmatpush3.bf16.msra.mxu1 %v3526_v19  ;;  %v3538_v47 = vpack.c.bf16 %v261_v44, %v260_v43  ;;  %v2950_v48 = vld [vmem:[%s4427_s4 + $0x20] sm:$0xff]  ;;  %v2951_v49 = vld [vmem:[%s4427_s4 + $0x28] sm:$0xff]  ;;  %v2952_v51 = vld [vmem:[%s4427_s4 + $0x30] sm:$0xff] }
   0x8   :  { %3523 = vmatprep.subr.bf16.mxu0 %v3522_v22  ;;  %3531 = vmatprep.subr.bf16.mxu1 %v3530_v25  ;;  %v3560_v50 = vpack.c.bf16 %v2951_v49, %v2950_v48  ;;  %v2953_v52 = vld [vmem:[%s4427_s4 + $0x38] sm:$0xff]  ;;  %v2931_v54 = vld [vmem:[%s4425_s2 + $0x5] ss:$0 sm:$0xff]  ;;  %v2928_v55 = vld [vmem:[%s4425_s2 + $0x3] ss:$0 sm:$0xff] }
   0x9   :  { %v3564_v53 = vpack.c.bf16 %v2953_v52, %v2952_v51  ;;  %vm3974_vm2 = vmpackc.low %vm342_vm1, %vm342_vm1  ;;  %v3997_v15 = vld [vmem:[%s4424_s1 + $0x8] sm:$0xff]  ;;  %v4002_v18 = vld [vmem:[%s4424_s1] sm:$0xff] }
   0xa   :  { %3525 = vmatpush3.bf16.msra.mxu0 %v3522_v22  ;;  %v2957_v48 = vld [vmem:[%s4428_s5 + $0x20] sm:$0xff]  ;;  %v2958_v49 = vld [vmem:[%s4428_s5 + $0x28] sm:$0xff]  ;;  %v2959_v51 = vld [vmem:[%s4428_s5 + $0x30] sm:$0xff] }
   0xb   :  { %3533 = vmatpush3.bf16.msra.mxu1 %v3530_v25  ;;  %3535 = vmatprep.subr.bf16.mxu0 %v3534_v28  ;;  %v2960_v52 = vld [vmem:[%s4428_s5 + $0x38] sm:$0xff] }
  0x90   :  { %v47_v4 = vpop.xlane.xlu0 %46 }
  0x91   :  { %v52_v5 = vmul.f32 0.03125, %v47_v4 }
  0x93   :  { %v54_v6 = vsub.f32 %v38_v0, %v52_v5 }
  0x94   :  { %v50_v7 = vpop.xlane.xlu0 %49 }
  0x95   :  { %v53_v8 = vmul.f32 0.03125, %v50_v7  ;;  %v56_v9 = vmul.f32 %v54_v6, %v54_v6 }
  0x97   :  { %v55_v10 = vsub.f32 %v39_v1, %v53_v8  ;;  %v58_v11 = vsel %vm44_vm0, %v56_v9, 0.0  ;;  %v2934_v1 = vld [vmem:[%s4425_s2 + $0x7] ss:$0 sm:$0xff]  ;;  %v2954_v8 = vld [vmem:[%s4425_s2 + $0x6] ss:$0 sm:$0xff] }
  0x98   :  { %59 = vadd.xlane.f32.xlu1 %v58_v11 }
  0x99   :  { %v57_v12 = vmul.f32 %v55_v10, %v55_v10 }
  0x9b   :  { %v61_v13 = vsel %vm44_vm0, %v57_v12, 0.0 }
  0x9c   :  { %62 = vadd.xlane.f32.xlu1 %v61_v13 }
 0x125   :  { %v60_v29 = vpop.xlane.xlu1 %59 }
 0x126   :  { %v64_v30 = vmul.f32 0.03125, %v60_v29 }
 0x128   :  { %v66_v31 = vadd.f32 1e-12, %v64_v30 }
 0x129   :  { %v63_v32 = vpop.xlane.xlu1 %62 }
 0x12a   :  { %3732 = vrsqrt.f32 %v66_v31  ;;  %v65_v33 = vmul.f32 0.03125, %v63_v32 }
 0x12c   :  { %v67_v34 = vadd.f32 1e-12, %v65_v33 }
 0x12e   :  { %3734 = vrsqrt.f32 %v67_v34  ;;  %v2943_v34 = vld [vmem:[%s4426_s3 + $0x20] sm:$0xff] }
 0x134   :  { %v3733_v35 = vpop.eup %3732 }
 0x135   :  { %v70_v37 = vmul.f32 %v3733_v35, %v54_v6  ;;  %v2944_v35 = vld [vmem:[%s4426_s3 + $0x28] sm:$0xff] }
 0x137   :  { %v76_v39 = vmul.f32 %v2926_v36, %v70_v37 }
 0x138   :  { %v3735_v40 = vpop.eup %3734 }
 0x139   :  { %v3928_v41 = vadd.f32 %v2927_v38, %v76_v39  ;;  %v71_v42 = vmul.f32 %v3735_v40, %v55_v10  ;;  %v2945_v40 = vld [vmem:[%s4426_s3 + $0x30] sm:$0xff] }
 0x13b   :  { %v77_v45 = vmul.f32 %v2926_v36, %v71_v42  ;;  %3239 = vmatprep.mubr.msk.f32.mxu0 %vm44_vm0, %v3928_v41  ;;  %3250 = vmatprep.mubr.msk.f32.mxu1 %vm44_vm0, %v3928_v41  ;;  %v3552_v36 = vpack.c.bf16 %v2944_v35, %v2943_v34  ;;  %v2946_v42 = vld [vmem:[%s4426_s3 + $0x38] sm:$0xff]  ;;  %v538_v34 = vld [vmem:[%s4429_s6 + $0x8] sm:$0xff] }
 0x13d   :  { %v3940_v46 = vadd.f32 %v2927_v38, %v77_v45 }
 0x13f   :  { %3240 = vmatmul.mubr.msk.f32.vlgmr.msra.gmra.mrb[0].mxu0 %vm44_vm0, %v3940_v46  ;;  %3251 = vmatmul.mubr.msk.f32.vlgmr.msra.gmra.mrb[0].mxu1 %vm44_vm0, %v3940_v46 }
 0x140   :  { %3537 = vmatpush3.bf16.msra.mxu0 %v3534_v28  ;;  %3261 = vmatprep.mubr.msk.f32.mxu0 %vm44_vm0, %v3928_v41 }
 0x141   :  { %3539 = vmatprep.subr.bf16.mxu0 %v3538_v47 }
 0x144   :  { %3541 = vmatpush3.bf16.msra.mxu0 %v3538_v47  ;;  %v3556_v47 = vpack.c.bf16 %v2946_v42, %v2945_v40 }
 0x145   :  { %3561 = vmatprep.subr.bf16.mxu0 %v3560_v50 }
 0x147   :  { %3262 = vmatmul.mubr.msk.f32.vlgmr.msra.gmra.mrb[2].mxu0 %vm44_vm0, %v3940_v46 }
 0x148   :  { %3563 = vmatpush3.bf16.msra.mxu0 %v3560_v50  ;;  %3297 = vmatprep.mubr.msk.f32.mxu0 %vm44_vm0, %v3928_v41  ;;  %v3568_v50 = vpack.c.bf16 %v2958_v49, %v2957_v48 }
 0x149   :  { %3565 = vmatprep.subr.bf16.mxu0 %v3564_v53 }
 0x14c   :  { %3567 = vmatpush3.bf16.msra.mxu0 %v3564_v53  ;;  %v3572_v53 = vpack.c.bf16 %v2960_v52, %v2959_v51 }
 0x14f   :  { %3298 = vmatmul.mubr.msk.f32.vlgmr.msra.gmra.mrb[4].mxu0 %vm44_vm0, %v3940_v46 }
 0x212   :  { %v3241_v56 = vpop.f32.mrb[0].mxu0  ;;  %v3252_v57 = vpop.f32.mrb[0].mxu1 }
 0x213   :  { %v255_v58 = vadd.f32 %v3252_v57, %v2931_v54  ;;  %v165_v59 = vpop.f32.mrb[1].mxu0  ;;  %v249_v60 = vpop.f32.mrb[1].mxu1  ;;  %v171_v6 = vadd.f32 %v3241_v56, %v2928_v55  ;;  %v2947_v56 = vld [vmem:[%s4425_s2 + $0x4] ss:$0 sm:$0xff] }
 0x214   :  { %v166_v61 = vadd.f32 %v2928_v55, %v165_v59  ;;  %v250_v62 = vadd.f32 %v2931_v54, %v249_v60 }
 0x216   :  { %v3542_v0 = vpack.c.bf16 %v255_v58, %v250_v62  ;;  %3268 = vmatprep.mubr.msk.f32.mxu1 %vm342_vm1, %v166_v61  ;;  %v2961_v61 = vld [vmem:[%s4425_s2 + $0x8] ss:$0 sm:$0xff] }
 0x218   :  { %3544 = vmatprep.subr.msk.bf16.mxu1 %vm3974_vm2, %v3542_v0 }
 0x219   :  { %3547 = vmatpush3.bf16.xpose.msk.msra.mxu1 %vm3974_vm2, %v3542_v0 }
 0x21a   :  { %v3263_v2 = vpop.f32.mrb[2].mxu0 }
 0x21b   :  { %v339_v3 = vadd.f32 %v3263_v2, %v2934_v1  ;;  %v333_v4 = vpop.f32.mrb[3].mxu0 }
 0x21c   :  { %v334_v5 = vadd.f32 %v2934_v1, %v333_v4 }
 0x21e   :  { %v3548_v7 = vpack.c.bf16 %v339_v3, %v334_v5 }
 0x220   :  { %3549 = vmatprep.subr.bf16.mxu1 %v3548_v7  ;;  %3269 = vmatmul.mubr.msk.f32.vlgmr.msra.gmra.mrb[2].mxu1 %vm342_vm1, %v171_v6 }
 0x221   :  { %3551 = vmatpush3.bf16.msra.mxu1 %v3548_v7 }
 0x222   :  { %v3299_v9 = vpop.f32.mrb[4].mxu0  ;;  %3553 = vmatprep.subr.bf16.mxu1 %v3552_v36 }
 0x223   :  { %v706_v10 = vadd.f32 %v3299_v9, %v2954_v8  ;;  %v700_v11 = vpop.f32.mrb[5].mxu0 }
 0x224   :  { %v701_v12 = vadd.f32 %v2954_v8, %v700_v11 }
 0x226   :  { %v3576_v13 = vpack.c.bf16 %v706_v10, %v701_v12 }
 0x228   :  { %3578 = vmatprep.subr.msk.bf16.mxu0 %vm3974_vm2, %v3576_v13 }
 0x229   :  { %3581 = vmatpush3.bf16.xpose.msk.msra.mxu0 %vm3974_vm2, %v3576_v13 }
 0x2f3   :  { %v3270_v14 = vpop.f32.mrb[2].mxu1 }
 0x2f4   :  { %v431_v16 = vmul.f32 0.25, %v3270_v14  ;;  %v421_v17 = vpop.f32.mrb[3].mxu1 }
 0x2f5   :  { %v430_v19 = vmul.f32 0.25, %v421_v17 }
 0x2f6   :  { %v433_v20 = vadd.f32 %v431_v16, %v3997_v15 }
 0x2f7   :  { %v432_v21 = vadd.f32 %v430_v19, %v4002_v18 }
 0x2f8   :  { %v437_v22 = vsel %vm342_vm1, %v433_v20, -inf }
 0x2f9   :  { %438 = vmax.xlane.f32.xlu1 %v437_v22  ;;  %v434_v23 = vsel %vm342_vm1, %v432_v21, -inf }
 0x2fa   :  { %435 = vmax.xlane.f32.xlu0 %v434_v23 }
 0x386   :  { %v439_v24 = vpop.xlane.xlu1 %438 }
 0x387   :  { %v441_v25 = vsub.f32 %v433_v20, %v439_v24  ;;  %v436_v26 = vpop.xlane.xlu0 %435  ;;  %v2970_v24 = vld [vmem:[%s4429_s6 + $0x10] sm:$0xff] }
 0x388   :  { %v440_v27 = vsub.f32 %v432_v21, %v436_v26 }
 0x389   :  { %v444_v28 = vmul.f32 1.442695, %v441_v25  ;;  %v2971_v25 = vld [vmem:[%s4429_s6 + $0x18] sm:$0xff] }
 0x38a   :  { %v442_v29 = vmul.f32 1.442695, %v440_v27  ;;  %v3586_v26 = vpack.c.bf16 %v2971_v25, %v2970_v24  ;;  %v1315_v25 = vld [vmem:[%s4431_s8 + $0x28] sm:$0xff] }
 0x38b   :  { %3736 = vpow2.f32 %v444_v28 }
 0x38c   :  { %3738 = vpow2.f32 %v442_v29  ;;  %3587 = vmatprep.subr.bf16.mxu0 %v3586_v26 }
 0x395   :  { %v3737_v30 = vpop.eup %3736 }
 0x396   :  { %v3739_v31 = vpop.eup %3738  ;;  %v449_v32 = vsel %vm342_vm1, %v3737_v30, 0.0 }
 0x397   :  { %450 = vadd.xlane.f32.xlu1 %v449_v32  ;;  %v446_v33 = vsel %vm342_vm1, %v3739_v31, 0.0 }
 0x398   :  { %447 = vadd.xlane.f32.xlu0 %v446_v33  ;;  %v537_v33 = vld [vmem:[%s4429_s6] sm:$0xff] }
 0x399   :  { %v3590_v35 = vpack.c.bf16 %v538_v34, %v537_v33 }
 0x424   :  { %v451_v37 = vpop.xlane.xlu1 %450 }
 0x425   :  { %3740 = vrcp.f32 %v451_v37  ;;  %v448_v38 = vpop.xlane.xlu0 %447 }
 0x426   :  { %3742 = vrcp.f32 %v448_v38  ;;  %v2976_v38 = vld [vmem:[%s4425_s2 + $0x9] ss:$0 sm:$0xff] }
 0x42f   :  { %v3741_v39 = vpop.eup %3740 }
 0x430   :  { %v3743_v43 = vpop.eup %3742  ;;  %v455_v45 = vmul.f32 %v3741_v39, %v3737_v30 }
 0x431   :  { %v454_v44 = vmul.f32 %v3743_v43, %v3739_v31 }
 0x433   :  { %3275 = vmatprep.mubr.msk.f32.mxu1 %vm342_vm1, %v454_v44 }
 0x434   :  { %3276 = vmatmul.mubr.msk.f32.vlgmr.msra.gmra.mrb[4].mxu1 %vm342_vm1, %v455_v45 }
 0x435   :  { %3555 = vmatpush3.bf16.msra.mxu1 %v3552_v36  ;;  %3286 = vmatprep.mubr.msk.f32.mxu1 %vm44_vm0, %v3928_v41 }
 0x436   :  { %3557 = vmatprep.subr.bf16.mxu1 %v3556_v47 }
 0x439   :  { %3559 = vmatpush3.bf16.msra.mxu1 %v3556_v47 }
 0x43a   :  { %3569 = vmatprep.subr.bf16.mxu1 %v3568_v50 }
 0x43c   :  { %3287 = vmatmul.mubr.msk.f32.vlgmr.msra.gmra.mrb[6].mxu1 %vm44_vm0, %v3940_v46 }
 0x43d   :  { %3571 = vmatpush3.bf16.msra.mxu1 %v3568_v50  ;;  %3308 = vmatprep.mubr.msk.f32.mxu1 %vm44_vm0, %v3928_v41 }
 0x43e   :  { %3573 = vmatprep.subr.bf16.mxu1 %v3572_v53 }
 0x441   :  { %3575 = vmatpush3.bf16.msra.mxu1 %v3572_v53 }
 0x444   :  { %3309 = vmatmul.mubr.msk.f32.vlgmr.msra.gmra.mrb[8].mxu1 %vm44_vm0, %v3940_v46 }
 0x507   :  { %v4044_v54 = vpop.f32.mrb[4].mxu1 }
 0x508   :  { %v4046_v55 = vpop.f32.mrb[5].mxu1 }
 0x50f   :  { %v3288_v57 = vpop.f32.mrb[6].mxu1 }
 0x510   :  { %v615_v58 = vpop.f32.mrb[7].mxu1  ;;  %v621_v60 = vadd.f32 %v3288_v57, %v2947_v56 }
 0x511   :  { %v616_v59 = vadd.f32 %v2947_v56, %v615_v58  ;;  %v1203_v58 = vld [vmem:[%s4430_s7 + $0x8] sm:$0xff] }
 0x513   :  { %3315 = vmatprep.mubr.msk.f32.mxu0 %vm342_vm1, %v616_v59 }
 0x514   :  { %3316 = vmatmul.mubr.msk.f32.vlgmr.msra.gmra.mrb[6].mxu0 %vm342_vm1, %v621_v60  ;;  %v1204_v60 = vld [vmem:[%s4430_s7 + $0x10] sm:$0xff] }
 0x515   :  { %3589 = vmatpush3.bf16.msra.mxu0 %v3586_v26 }
 0x516   :  { %3591 = vmatprep.subr.bf16.mxu0 %v3590_v35 }
 0x517   :  { %v3310_v62 = vpop.f32.mrb[8].mxu1 }
 0x518   :  { %v791_v0 = vadd.f32 %v3310_v62, %v2961_v61  ;;  %v785_v1 = vpop.f32.mrb[9].mxu1 }
 0x519   :  { %v786_v2 = vadd.f32 %v2961_v61, %v785_v1  ;;  %v1205_v61 = vld [vmem:[%s4430_s7 + $0x18] sm:$0xff] }
 0x51a   :  { %v3598_v62 = vpack.c.bf16 %v1205_v61, %v1204_v60 }
 0x51b   :  { %v3582_v3 = vpack.c.bf16 %v791_v0, %v786_v2 }
 0x51d   :  { %3583 = vmatprep.subr.bf16.mxu1 %v3582_v3 }
 0x51e   :  { %3585 = vmatpush3.bf16.msra.mxu1 %v3582_v3 }
 0x5e7   :  { %v3317_v4 = vpop.f32.mrb[6].mxu0 }
 0x5e8   :  { %v882_v5 = vmul.f32 0.25, %v3317_v4  ;;  %v872_v6 = vpop.f32.mrb[7].mxu0 }
 0x5e9   :  { %v881_v7 = vmul.f32 0.25, %v872_v6 }
 0x5ea   :  { %v884_v8 = vadd.f32 %v882_v5, %v3997_v15 }
 0x5eb   :  { %v883_v9 = vadd.f32 %v881_v7, %v4002_v18  ;;  %v2977_v7 = vld [vmem:[%s4425_s2 + $0xa] ss:$0 sm:$0xff] }
 0x5ec   :  { %v888_v10 = vsel %vm342_vm1, %v884_v8, -inf }
 0x5ed   :  { %889 = vmax.xlane.f32.xlu1 %v888_v10  ;;  %v885_v11 = vsel %vm342_vm1, %v883_v9, -inf }
 0x5ee   :  { %886 = vmax.xlane.f32.xlu0 %v885_v11  ;;  %v2978_v11 = vld [vmem:[%s4425_s2 + $0xb] ss:$0 sm:$0xff] }
 0x67a   :  { %v890_v12 = vpop.xlane.xlu1 %889 }
 0x67b   :  { %v892_v13 = vsub.f32 %v884_v8, %v890_v12  ;;  %v887_v14 = vpop.xlane.xlu0 %886 }
 0x67c   :  { %v891_v16 = vsub.f32 %v883_v9, %v887_v14 }
 0x67d   :  { %v895_v17 = vmul.f32 1.442695, %v892_v13 }
 0x67e   :  { %v893_v19 = vmul.f32 1.442695, %v891_v16 }
 0x67f   :  { %3744 = vpow2.f32 %v895_v17  ;;  %v1310_v17 = vld [vmem:[%s4431_s8] sm:$0xff] }
 0x680   :  { %3746 = vpow2.f32 %v893_v19  ;;  %v1311_v19 = vld [vmem:[%s4431_s8 + $0x8] sm:$0xff] }
 0x689   :  { %v3745_v20 = vpop.eup %3744 }
 0x68a   :  { %v3747_v21 = vpop.eup %3746  ;;  %v900_v22 = vsel %vm342_vm1, %v3745_v20, 0.0 }
 0x68b   :  { %901 = vadd.xlane.f32.xlu1 %v900_v22  ;;  %v897_v23 = vsel %vm342_vm1, %v3747_v21, 0.0  ;;  %v1313_v22 = vld [vmem:[%s4431_s8 + $0x18] sm:$0xff] }
 0x68c   :  { %898 = vadd.xlane.f32.xlu0 %v897_v23  ;;  %v1314_v23 = vld [vmem:[%s4431_s8 + $0x20] sm:$0xff] }
 0x68d   :  { %v3610_v26 = vpack.c.bf16 %v1315_v25, %v1314_v23  ;;  %v2994_v23 = vld [vmem:[%s4427_s4 + $0x40] sm:$0xff] }
 0x718   :  { %v902_v27 = vpop.xlane.xlu1 %901 }
 0x719   :  { %3748 = vrcp.f32 %v902_v27  ;;  %v899_v28 = vpop.xlane.xlu0 %898  ;;  %v1316_v27 = vld [vmem:[%s4431_s8 + $0x30] sm:$0xff] }
 0x71a   :  { %3750 = vrcp.f32 %v899_v28  ;;  %v1317_v28 = vld [vmem:[%s4431_s8 + $0x38] sm:$0xff] }
 0x723   :  { %v3749_v29 = vpop.eup %3748 }
 0x724   :  { %v3751_v30 = vpop.eup %3750  ;;  %v906_v32 = vmul.f32 %v3749_v29, %v3745_v20  ;;  %v3602_v20 = vpack.c.bf16 %v1311_v19, %v1310_v17  ;;  %v3614_v29 = vpack.c.bf16 %v1317_v28, %v1316_v27  ;;  %v2990_v17 = vld [vmem:[%s4426_s3 + $0x58] sm:$0xff] }
 0x725   :  { %v905_v31 = vmul.f32 %v3751_v30, %v3747_v21  ;;  %v1312_v21 = vld [vmem:[%s4431_s8 + $0x10] sm:$0xff]  ;;  %v2979_v30 = vld [vmem:[%s4425_s2 + $0xc] ss:$0 sm:$0xff] }
 0x726   :  { %v3606_v24 = vpack.c.bf16 %v1313_v22, %v1312_v21  ;;  %v3004_v21 = vld [vmem:[%s4428_s5 + $0x58] sm:$0xff] }
 0x727   :  { %3322 = vmatprep.mubr.msk.f32.mxu1 %vm342_vm1, %v905_v31 }
 0x728   :  { %3323 = vmatmul.mubr.msk.f32.vlgmr.msra.gmra.mrb[10].mxu1 %vm342_vm1, %v906_v32 }
 0x7fb   :  { %v3324_v36 = vpop.f32.mrb[10].mxu1 }
 0x7fc   :  { %v979_v37 = vpop.f32.mrb[11].mxu1 }
 0x7fd   :  { %3329 = vmatprep.mubr.msk.f32.mxu0 %vm342_vm1, %v979_v37 }
 0x7fe   :  { %3330 = vmatmul.mubr.msk.f32.vlgmr.msra.gmra.mrb[8].mxu0 %vm342_vm1, %v3324_v36 }
 0x7ff   :  { %3593 = vmatpush3.bf16.msra.mxu0 %v3590_v35  ;;  %3336 = vmatprep.mubr.msk.f32.mxu0 %vm342_vm1, %v4046_v55 }
 0x800   :  { %3603 = vmatprep.subr.bf16.mxu0 %v3602_v20 }
 0x806   :  { %3337 = vmatmul.mubr.msk.f32.vlgmr.msra.gmra.mrb[8].mxu0 %vm342_vm1, %v4044_v54 }
 0x807   :  { %3605 = vmatpush3.bf16.msra.mxu0 %v3602_v20  ;;  %v3003_v20 = vld [vmem:[%s4428_s5 + $0x50] sm:$0xff] }
 0x808   :  { %3607 = vmatprep.subr.bf16.mxu0 %v3606_v24  ;;  %v3638_v22 = vpack.c.bf16 %v3004_v21, %v3003_v20  ;;  %v3020_v21 = vld [vmem:[%s4425_s2 + $0x11] ss:$0 sm:$0xff] }
 0x80b   :  { %3609 = vmatpush3.bf16.msra.mxu0 %v3606_v24  ;;  %v2995_v24 = vld [vmem:[%s4427_s4 + $0x48] sm:$0xff] }
 0x80c   :  { %3611 = vmatprep.subr.bf16.mxu0 %v3610_v26  ;;  %v3626_v25 = vpack.c.bf16 %v2995_v24, %v2994_v23 }
 0x80f   :  { %3613 = vmatpush3.bf16.msra.mxu0 %v3610_v26 }
 0x810   :  { %3615 = vmatprep.subr.bf16.mxu0 %v3614_v29 }
 0x813   :  { %3617 = vmatpush3.bf16.msra.mxu0 %v3614_v29 }
 0x8d9   :  { %v3338_v39 = vpop.f32.mrb[8].mxu0 }
 0x8da   :  { %v1159_v40 = vadd.f32 %v3338_v39, %v2976_v38  ;;  %v1144_v42 = vpop.f32.mrb[9].mxu0 }
 0x8db   :  { %v1158_v43 = vadd.f32 %v2976_v38, %v1144_v42 }
 0x8dc   :  { %v1161_v44 = vadd.f32 %v1159_v40, %v3940_v46 }
 0x8dd   :  { %v1160_v45 = vadd.f32 %v1158_v43, %v3928_v41  ;;  %v1202_v41 = vld [vmem:[%s4430_s7] sm:$0xff] }
 0x8de   :  { %v1167_v47 = vsel %vm44_vm0, %v1161_v44, 0.0  ;;  %v3594_v59 = vpack.c.bf16 %v1203_v58, %v1202_v41 }
 0x8df   :  { %1168 = vadd.xlane.f32.xlu1 %v1167_v47  ;;  %v1164_v48 = vsel %vm44_vm0, %v1160_v45, 0.0 }
 0x8e0   :  { %1165 = vadd.xlane.f32.xlu0 %v1164_v48  ;;  %3595 = vmatprep.subr.bf16.mxu1 %v3594_v59 }
 0x8e1   :  { %3597 = vmatpush3.bf16.msra.mxu1 %v3594_v59 }
 0x8e2   :  { %3599 = vmatprep.subr.bf16.mxu1 %v3598_v62 }
 0x8e5   :  { %3601 = vmatpush3.bf16.msra.mxu1 %v3598_v62 }
 0x96c   :  { %v1169_v49 = vpop.xlane.xlu1 %1168 }
 0x96d   :  { %v1171_v50 = vmul.f32 0.03125, %v1169_v49  ;;  %v1166_v51 = vpop.xlane.xlu0 %1165 }
 0x96e   :  { %v1170_v52 = vmul.f32 0.03125, %v1166_v51 }
 0x96f   :  { %v1173_v53 = vsub.f32 %v1161_v44, %v1171_v50 }
 0x970   :  { %v1172_v54 = vsub.f32 %v1160_v45, %v1170_v52 }
 0x971   :  { %v1175_v55 = vmul.f32 %v1173_v53, %v1173_v53 }
 0x972   :  { %v1174_v56 = vmul.f32 %v1172_v54, %v1172_v54 }
 0x973   :  { %v1179_v57 = vsel %vm44_vm0, %v1175_v55, 0.0  ;;  %v2982_v55 = vld [vmem:[%s4425_s2 + $0xd] ss:$0 sm:$0xff] }
 0x974   :  { %1180 = vadd.xlane.f32.xlu1 %v1179_v57  ;;  %v1176_v46 = vsel %vm44_vm0, %v1174_v56, 0.0 }
 0x975   :  { %1177 = vadd.xlane.f32.xlu0 %v1176_v46 }
 0xa01   :  { %v1181_v0 = vpop.xlane.xlu1 %1180 }
 0xa02   :  { %v1183_v1 = vmul.f32 0.03125, %v1181_v0  ;;  %v1178_v2 = vpop.xlane.xlu0 %1177 }
 0xa03   :  { %v1182_v3 = vmul.f32 0.03125, %v1178_v2 }
 0xa04   :  { %v1185_v4 = vadd.f32 1e-12, %v1183_v1 }
 0xa05   :  { %v1184_v5 = vadd.f32 1e-12, %v1182_v3 }
 0xa06   :  { %3752 = vrsqrt.f32 %v1185_v4 }
 0xa07   :  { %3754 = vrsqrt.f32 %v1184_v5 }
 0xa10   :  { %v3753_v6 = vpop.eup %3752 }
 0xa11   :  { %v3755_v8 = vpop.eup %3754  ;;  %v1189_v9 = vmul.f32 %v3753_v6, %v1173_v53 }
 0xa12   :  { %v1188_v10 = vmul.f32 %v3755_v8, %v1172_v54 }
 0xa13   :  { %v1195_v12 = vmul.f32 %v2977_v7, %v1189_v9  ;;  %v2987_v9 = vld [vmem:[%s4426_s3 + $0x40] sm:$0xff] }
 0xa14   :  { %v1194_v13 = vmul.f32 %v2977_v7, %v1188_v10  ;;  %v2988_v10 = vld [vmem:[%s4426_s3 + $0x48] sm:$0xff] }
 0xa15   :  { %v1201_v16 = vadd.f32 %v2978_v11, %v1195_v12  ;;  %v3001_v12 = vld [vmem:[%s4428_s5 + $0x40] sm:$0xff] }
 0xa16   :  { %v1200_v14 = vadd.f32 %v2978_v11, %v1194_v13  ;;  %v3618_v11 = vpack.c.bf16 %v2988_v10, %v2987_v9  ;;  %v3002_v13 = vld [vmem:[%s4428_s5 + $0x48] sm:$0xff]  ;;  %v3033_v9 = vld [vmem:[%s4428_s5 + $0x78] sm:$0xff] }
 0xa18   :  { %3347 = vmatprep.mubr.msk.f32.mxu1 %vm44_vm0, %v1200_v14  ;;  %3619 = vmatprep.subr.bf16.mxu1 %v3618_v11 }
 0xa19   :  { %3348 = vmatmul.mubr.msk.f32.vlgmr.msra.gmra.mrb[12].mxu1 %vm44_vm0, %v1201_v16 }
 0xa1a   :  { %3621 = vmatpush3.bf16.msra.mxu1 %v3618_v11 }
 0xaec   :  { %v3349_v31 = vpop.f32.mrb[12].mxu1 }
 0xaed   :  { %v1289_v32 = vadd.f32 %v3349_v31, %v2979_v30  ;;  %v1283_v33 = vpop.f32.mrb[13].mxu1 }
 0xaee   :  { %v1284_v34 = vadd.f32 %v2979_v30, %v1283_v33  ;;  %v2985_v33 = vld [vmem:[%s4425_s2 + $0xe] ss:$0 sm:$0xff] }
 0xaef   :  { %v1295_v35 = vmul.f32 0.044715, %v1289_v32  ;;  %v1293_v52 = vmul.f32 0.5, %v1289_v32 }
 0xaf0   :  { %v1294_v36 = vmul.f32 0.044715, %v1284_v34  ;;  %v1292_v50 = vmul.f32 0.5, %v1284_v34 }
 0xaf1   :  { %v1297_v37 = vmul.f32 %v1295_v35, %v1289_v32 }
 0xaf2   :  { %v1296_v38 = vmul.f32 %v1294_v36, %v1284_v34 }
 0xaf3   :  { %v1299_v39 = vmul.f32 %v1297_v37, %v1289_v32  ;;  %v2986_v37 = vld [vmem:[%s4425_s2 + $0xf] ss:$0 sm:$0xff] }
 0xaf4   :  { %v1298_v40 = vmul.f32 %v1296_v38, %v1284_v34 }
 0xaf5   :  { %v1301_v42 = vadd.f32 %v1299_v39, %v1289_v32 }
 0xaf6   :  { %v1300_v43 = vadd.f32 %v1298_v40, %v1284_v34  ;;  %v2996_v40 = vld [vmem:[%s4427_s4 + $0x50] sm:$0xff] }
 0xaf7   :  { %v1303_v44 = vmul.f32 0.7978846, %v1301_v42  ;;  %v2997_v42 = vld [vmem:[%s4427_s4 + $0x58] sm:$0xff] }
 0xaf8   :  { %v1302_v45 = vmul.f32 0.7978846, %v1300_v43 }
 0xaf9   :  { %3756 = vtanh.f32 %v1303_v44 }
 0xafa   :  { %3758 = vtanh.f32 %v1302_v45  ;;  %v3630_v45 = vpack.c.bf16 %v2997_v42, %v2996_v40  ;;  %v3023_v42 = vld [vmem:[%s4427_s4 + $0x60] sm:$0xff] }
 0xb03   :  { %v3757_v47 = vpop.eup %3756 }
 0xb04   :  { %v3759_v48 = vpop.eup %3758  ;;  %v1307_v49 = vadd.f32 1.0, %v3757_v47  ;;  %v3005_v47 = vld [vmem:[%s4425_s2 + $0x14] ss:$0 sm:$0xff] }
 0xb05   :  { %v1306_v51 = vadd.f32 1.0, %v3759_v48  ;;  %v2991_v48 = vld [vmem:[%s4425_s2 + $0x10] ss:$0 sm:$0xff] }
 0xb06   :  { %v1309_v54 = vmul.f32 %v1307_v49, %v1293_v52 }
 0xb07   :  { %v1308_v53 = vmul.f32 %v1306_v51, %v1292_v50 }
 0xb09   :  { %3366 = vmatprep.mubr.msk.f32.mxu0 %vm1323_vm3, %v1308_v53 }
 0xb0a   :  { %3367 = vmatmul.mubr.msk.f32.vlgmr.msra.gmra.mrb[10].mxu0 %vm1323_vm3, %v1309_v54 }
 0xbdd   :  { %v3368_v56 = vpop.f32.mrb[10].mxu0 }
 0xbde   :  { %v1402_v57 = vadd.f32 %v3368_v56, %v2982_v55  ;;  %v1396_v46 = vpop.f32.mrb[11].mxu0 }
 0xbdf   :  { %v1397_v41 = vadd.f32 %v2982_v55, %v1396_v46 }
 0xbe0   :  { %v1406_v58 = vadd.f32 %v1402_v57, %v1201_v16  ;;  %v2989_v16 = vld [vmem:[%s4426_s3 + $0x50] sm:$0xff] }
 0xbe1   :  { %v1405_v59 = vadd.f32 %v1397_v41, %v1200_v14  ;;  %v3634_v14 = vpack.c.bf16 %v3002_v13, %v3001_v12  ;;  %v3622_v19 = vpack.c.bf16 %v2990_v17, %v2989_v16  ;;  %v2998_v57 = vld [vmem:[%s4425_s2 + $0x12] ss:$0 sm:$0xff] }
 0xbe2   :  { %v1412_v60 = vsel %vm44_vm0, %v1406_v58, 0.0 }
 0xbe3   :  { %1413 = vadd.xlane.f32.xlu1 %v1412_v60  ;;  %v1409_v61 = vsel %vm44_vm0, %v1405_v59, 0.0  ;;  %3635 = vmatprep.subr.bf16.mxu0 %v3634_v14  ;;  %v3017_v60 = vld [vmem:[%s4426_s3 + $0x68] sm:$0xff] }
 0xbe4   :  { %1410 = vadd.xlane.f32.xlu0 %v1409_v61  ;;  %3637 = vmatpush3.bf16.msra.mxu0 %v3634_v14 }
 0xbe5   :  { %3623 = vmatprep.subr.bf16.mxu1 %v3622_v19  ;;  %3639 = vmatprep.subr.bf16.mxu0 %v3638_v22 }
 0xbe6   :  { %3625 = vmatpush3.bf16.msra.mxu1 %v3622_v19 }
 0xbe7   :  { %3627 = vmatprep.subr.bf16.mxu1 %v3626_v25 }
 0xbe8   :  { %3641 = vmatpush3.bf16.msra.mxu0 %v3638_v22 }
 0xc70   :  { %v1414_v62 = vpop.xlane.xlu1 %1413 }
 0xc71   :  { %v1416_v0 = vmul.f32 0.03125, %v1414_v62  ;;  %v1411_v1 = vpop.xlane.xlu0 %1410 }
 0xc72   :  { %v1415_v2 = vmul.f32 0.03125, %v1411_v1  ;;  %v3018_v1 = vld [vmem:[%s4426_s3 + $0x70] sm:$0xff] }
 0xc73   :  { %v1418_v3 = vsub.f32 %v1406_v58, %v1416_v0 }
 0xc74   :  { %v1417_v4 = vsub.f32 %v1405_v59, %v1415_v2  ;;  %v3016_v59 = vld [vmem:[%s4426_s3 + $0x60] sm:$0xff]  ;;  %v3019_v2 = vld [vmem:[%s4426_s3 + $0x78] sm:$0xff]  ;;  %s2916_s3 = sshll.u32 %s3821_s30, 4  ;;  %s2917_s3 = int_to_ptr.vmem [resolvable:$true] %s2916_s3 }
 0xc75   :  { %v1420_v5 = vmul.f32 %v1418_v3, %v1418_v3  ;;  %v3652_v0 = vpack.c.bf16 %v3017_v60, %v3016_v59  ;;  %s3794_s12 = scalar_lea.vmem %s2917_s3, 32  ;;  %p3799_p1 = scmp.lt.s32.totalorder %s2917_s3, %s2917_s3 }
 0xc76   :  { %v1419_v6 = vmul.f32 %v1417_v4, %v1417_v4  ;;  %p3795_p0 = scmp.ne.s32.totalorder %s2917_s3, %s3794_s12  ;;  %p3800_p2 = scmp.lt.s32.totalorder %s3794_s12, %s3794_s12 }
 0xc77   :  { %v1424_v7 = vsel %vm44_vm0, %v1420_v5, 0.0  ;;  %v3030_v5 = vld [vmem:[%s4428_s5 + $0x60] sm:$0xff] }
 0xc78   :  { %1425 = vadd.xlane.f32.xlu1 %v1424_v7  ;;  %v1421_v8 = vsel %vm44_vm0, %v1419_v6, 0.0  ;;  %v3031_v6 = vld [vmem:[%s4428_s5 + $0x68] sm:$0xff]  ;;  %p3801_p3 = por %p3800_p2, %p3799_p1 }
 0xc79   :  { %1422 = vadd.xlane.f32.xlu0 %v1421_v8  ;;  %v3668_v7 = vpack.c.bf16 %v3031_v6, %v3030_v5  ;;  %v3032_v8 = vld [vmem:[%s4428_s5 + $0x70] sm:$0xff] }
 0xc7a   :  { %v3672_v10 = vpack.c.bf16 %v3033_v9, %v3032_v8  ;;  %p3802_p4 = pnand %p3801_p3, %p3795_p0 }
 0xd05   :  { %v1426_v26 = vpop.xlane.xlu1 %1425 }
 0xd06   :  { %v1428_v27 = vmul.f32 0.03125, %v1426_v26  ;;  %v1423_v28 = vpop.xlane.xlu0 %1422 }
 0xd07   :  { %v1427_v29 = vmul.f32 0.03125, %v1423_v28 }
 0xd08   :  { %v1430_v30 = vadd.f32 1e-12, %v1428_v27 }
 0xd09   :  { %v1429_v31 = vadd.f32 1e-12, %v1427_v29 }
 0xd0a   :  { %3760 = vrsqrt.f32 %v1430_v30 }
 0xd0b   :  { %3762 = vrsqrt.f32 %v1429_v31 }
 0xd14   :  { %v3761_v32 = vpop.eup %3760 }
 0xd15   :  { %v3763_v34 = vpop.eup %3762  ;;  %v1434_v35 = vmul.f32 %v3761_v32, %v1418_v3 }
 0xd16   :  { %v1433_v36 = vmul.f32 %v3763_v34, %v1417_v4  ;;  %v3656_v4 = vpack.c.bf16 %v3019_v2, %v3018_v1 }
 0xd17   :  { %v1440_v38 = vmul.f32 %v2985_v33, %v1434_v35 }
 0xd18   :  { %v1439_v39 = vmul.f32 %v2985_v33, %v1433_v36 }
 0xd19   :  { %v4191_v44 = vadd.f32 %v2986_v37, %v1440_v38 }
 0xd1a   :  { %v4189_v43 = vadd.f32 %v2986_v37, %v1439_v39 }
 0xd1c   :  { %3377 = vmatprep.mubr.msk.f32.mxu1 %vm44_vm0, %v4189_v43  ;;  %3399 = vmatprep.mubr.msk.f32.mxu0 %vm44_vm0, %v4189_v43 }
 0xd1d   :  { %3378 = vmatmul.mubr.msk.f32.vlgmr.msra.gmra.mrb[14].mxu1 %vm44_vm0, %v4191_v44  ;;  %3400 = vmatmul.mubr.msk.f32.vlgmr.msra.gmra.mrb[12].mxu0 %vm44_vm0, %v4191_v44 }
 0xd1e   :  { %3629 = vmatpush3.bf16.msra.mxu1 %v3626_v25  ;;  %3388 = vmatprep.mubr.msk.f32.mxu1 %vm44_vm0, %v4189_v43  ;;  %v3034_v25 = vld [vmem:[%s4425_s2 + $0x15] ss:$0 sm:$0xff] }
 0xd1f   :  { %3631 = vmatprep.subr.bf16.mxu1 %v3630_v45 }
 0xd22   :  { %3633 = vmatpush3.bf16.msra.mxu1 %v3630_v45  ;;  %v3024_v45 = vld [vmem:[%s4427_s4 + $0x68] sm:$0xff] }
 0xd25   :  { %3389 = vmatmul.mubr.msk.f32.vlgmr.msra.gmra.mrb[16].mxu1 %vm44_vm0, %v4191_v44 }
 0xdf0   :  { %v3379_v49 = vpop.f32.mrb[14].mxu1  ;;  %v3401_v50 = vpop.f32.mrb[12].mxu0 }
 0xdf1   :  { %v1705_v51 = vadd.f32 %v3401_v50, %v3005_v47  ;;  %v1529_v52 = vpop.f32.mrb[15].mxu1  ;;  %v1699_v53 = vpop.f32.mrb[13].mxu0  ;;  %v1535_v3 = vadd.f32 %v3379_v49, %v2991_v48 }
 0xdf2   :  { %v1530_v54 = vadd.f32 %v2991_v48, %v1529_v52  ;;  %v1700_v55 = vadd.f32 %v3005_v47, %v1699_v53  ;;  %v3660_v47 = vpack.c.bf16 %v3024_v45, %v3023_v42  ;;  %v3026_v52 = vld [vmem:[%s4427_s4 + $0x78] sm:$0xff] }
 0xdf4   :  { %v3648_v56 = vpack.c.bf16 %v1705_v51, %v1700_v55  ;;  %3406 = vmatprep.mubr.msk.f32.mxu1 %vm342_vm1, %v1530_v54  ;;  %v3025_v51 = vld [vmem:[%s4427_s4 + $0x70] sm:$0xff] }
 0xdf6   :  { %3649 = vmatprep.subr.bf16.mxu0 %v3648_v56 }
 0xdf7   :  { %3651 = vmatpush3.bf16.msra.mxu0 %v3648_v56  ;;  %v3664_v56 = vpack.c.bf16 %v3026_v52, %v3025_v51 }
 0xdf8   :  { %v3390_v46 = vpop.f32.mrb[16].mxu1  ;;  %3661 = vmatprep.subr.bf16.mxu0 %v3660_v47 }
 0xdf9   :  { %v1620_v41 = vadd.f32 %v3390_v46, %v2998_v57  ;;  %v1614_v58 = vpop.f32.mrb[17].mxu1 }
 0xdfa   :  { %v1615_v61 = vadd.f32 %v2998_v57, %v1614_v58  ;;  %v3027_v58 = vld [vmem:[%s4425_s2 + $0x13] ss:$0 sm:$0xff] }
 0xdfc   :  { %v3642_v62 = vpack.c.bf16 %v1620_v41, %v1615_v61 }
 0xdfe   :  { %3644 = vmatprep.subr.msk.bf16.mxu1 %vm3974_vm2, %v3642_v62 }
 0xdff   :  { %3647 = vmatpush3.bf16.xpose.msk.msra.mxu1 %vm3974_vm2, %v3642_v62 }
 0xe00   :  { %3653 = vmatprep.subr.bf16.mxu1 %v3652_v0 }
 0xe06   :  { %3407 = vmatmul.mubr.msk.f32.vlgmr.msra.gmra.mrb[18].mxu1 %vm342_vm1, %v1535_v3 }
 0xe07   :  { %3655 = vmatpush3.bf16.msra.mxu1 %v3652_v0  ;;  %3424 = vmatprep.mubr.msk.f32.mxu1 %vm44_vm0, %v4189_v43 }
 0xe08   :  { %3657 = vmatprep.subr.bf16.mxu1 %v3656_v4 }
 0xe0b   :  { %3659 = vmatpush3.bf16.msra.mxu1 %v3656_v4 }
 0xe0c   :  { %3669 = vmatprep.subr.bf16.mxu1 %v3668_v7 }
 0xe0e   :  { %3425 = vmatmul.mubr.msk.f32.vlgmr.msra.gmra.mrb[20].mxu1 %vm44_vm0, %v4191_v44 }
 0xe0f   :  { %3671 = vmatpush3.bf16.msra.mxu1 %v3668_v7  ;;  %3446 = vmatprep.mubr.msk.f32.mxu1 %vm44_vm0, %v4189_v43 }
 0xe10   :  { %3673 = vmatprep.subr.bf16.mxu1 %v3672_v10 }
 0xe13   :  { %3675 = vmatpush3.bf16.msra.mxu1 %v3672_v10 }
 0xe16   :  { %3447 = vmatmul.mubr.msk.f32.vlgmr.msra.gmra.mrb[22].mxu1 %vm44_vm0, %v4191_v44 }
 0xed9   :  { %v3408_v11 = vpop.f32.mrb[18].mxu1 }
 0xeda   :  { %v1796_v12 = vmul.f32 0.25, %v3408_v11  ;;  %v1786_v13 = vpop.f32.mrb[19].mxu1 }
 0xedb   :  { %v1795_v14 = vmul.f32 0.25, %v1786_v13 }
 0xedc   :  { %v1798_v16 = vadd.f32 %v1796_v12, %v3997_v15 }
 0xedd   :  { %v1797_v17 = vadd.f32 %v1795_v14, %v4002_v18 }
 0xede   :  { %v1802_v19 = vsel %vm342_vm1, %v1798_v16, -inf }
 0xedf   :  { %1803 = vmax.xlane.f32.xlu1 %v1802_v19  ;;  %v1799_v20 = vsel %vm342_vm1, %v1797_v17, -inf  ;;  %v3044_v19 = vld [vmem:[%s4429_s6 + $0x38] sm:$0xff] }
 0xee0   :  { %1800 = vmax.xlane.f32.xlu0 %v1799_v20 }
 0xee1   :  { %v3426_v22 = vpop.f32.mrb[20].mxu1 }
 0xee2   :  { %v1987_v23 = vadd.f32 %v3426_v22, %v3020_v21  ;;  %v1981_v24 = vpop.f32.mrb[21].mxu1 }
 0xee3   :  { %v1982_v57 = vadd.f32 %v3020_v21, %v1981_v24 }
 0xee9   :  { %v3448_v26 = vpop.f32.mrb[22].mxu1 }
 0xeea   :  { %v2157_v27 = vadd.f32 %v3448_v26, %v3034_v25  ;;  %v2151_v28 = vpop.f32.mrb[23].mxu1 }
 0xeeb   :  { %v2152_v29 = vadd.f32 %v3034_v25, %v2151_v28  ;;  %v3015_v28 = vld [vmem:[%s4429_s6 + $0x28] sm:$0xff] }
 0xeed   :  { %v3682_v30 = vpack.c.bf16 %v2157_v27, %v2152_v29  ;;  %v3014_v27 = vld [vmem:[%s4429_s6 + $0x20] sm:$0xff] }
 0xeee   :  { %v3690_v29 = vpack.c.bf16 %v3015_v28, %v3014_v27 }
 0xeef   :  { %3683 = vmatprep.subr.bf16.mxu1 %v3682_v30 }
 0xef0   :  { %3685 = vmatpush3.bf16.msra.mxu1 %v3682_v30 }
 0xf6c   :  { %v1804_v31 = vpop.xlane.xlu1 %1803 }
 0xf6d   :  { %v1806_v32 = vsub.f32 %v1798_v16, %v1804_v31  ;;  %v1801_v33 = vpop.xlane.xlu0 %1800 }
 0xf6e   :  { %v1805_v34 = vsub.f32 %v1797_v17, %v1801_v33  ;;  %v3043_v17 = vld [vmem:[%s4429_s6 + $0x30] sm:$0xff] }
 0xf6f   :  { %v1809_v35 = vmul.f32 1.442695, %v1806_v32  ;;  %v3686_v20 = vpack.c.bf16 %v3044_v19, %v3043_v17  ;;  %v3049_v32 = vld [vmem:[%s4425_s2 + $0x16] ss:$0 sm:$0xff]  ;;  %v3066_v19 = vld [vmem:[%s4431_s8 + $0x78] sm:$0xff] }
 0xf70   :  { %v1807_v36 = vmul.f32 1.442695, %v1805_v34  ;;  %v3065_v17 = vld [vmem:[%s4431_s8 + $0x70] sm:$0xff] }
 0xf71   :  { %3764 = vpow2.f32 %v1809_v35 }
 0xf72   :  { %3766 = vpow2.f32 %v1807_v36 }
 0xf7b   :  { %v3765_v37 = vpop.eup %3764 }
 0xf7c   :  { %v3767_v38 = vpop.eup %3766  ;;  %v1814_v39 = vsel %vm342_vm1, %v3765_v37, 0.0 }
 0xf7d   :  { %1815 = vadd.xlane.f32.xlu1 %v1814_v39  ;;  %v1811_v40 = vsel %vm342_vm1, %v3767_v38, 0.0 }
 0xf7e   :  { %1812 = vadd.xlane.f32.xlu0 %v1811_v40 }
0x100a   :  { %v1816_v48 = vpop.xlane.xlu1 %1815 }
0x100b   :  { %3768 = vrcp.f32 %v1816_v48  ;;  %v1813_v49 = vpop.xlane.xlu0 %1812 }
0x100c   :  { %3770 = vrcp.f32 %v1813_v49 }
0x1015   :  { %v3769_v50 = vpop.eup %3768 }
0x1016   :  { %v3771_v53 = vpop.eup %3770  ;;  %v1820_v55 = vmul.f32 %v3769_v50, %v3765_v37 }
0x1017   :  { %v1819_v54 = vmul.f32 %v3771_v53, %v3767_v38 }
0x1019   :  { %3413 = vmatprep.mubr.msk.f32.mxu0 %vm342_vm1, %v1819_v54  ;;  %v3053_v54 = vld [vmem:[%s4430_s7 + $0x28] sm:$0xff] }
0x101a   :  { %3414 = vmatmul.mubr.msk.f32.vlgmr.msra.gmra.mrb[14].mxu0 %vm342_vm1, %v1820_v55 }
0x101b   :  { %3663 = vmatpush3.bf16.msra.mxu0 %v3660_v47  ;;  %3435 = vmatprep.mubr.msk.f32.mxu0 %vm44_vm0, %v4189_v43 }
0x101c   :  { %3665 = vmatprep.subr.bf16.mxu0 %v3664_v56 }
0x101f   :  { %3667 = vmatpush3.bf16.msra.mxu0 %v3664_v56  ;;  %v3054_v56 = vld [vmem:[%s4430_s7 + $0x30] sm:$0xff] }
0x1022   :  { %3436 = vmatmul.mubr.msk.f32.vlgmr.msra.gmra.mrb[16].mxu0 %vm44_vm0, %v4191_v44 }
0x1023   :  { %3453 = vmatprep.mubr.msk.f32.mxu0 %vm342_vm1, %v1982_v57  ;;  %v3055_v57 = vld [vmem:[%s4430_s7 + $0x38] sm:$0xff] }
0x10ed   :  { %v3415_v46 = vpop.f32.mrb[14].mxu0 }
0x10ee   :  { %v1893_v41 = vpop.f32.mrb[15].mxu0 }
0x10f5   :  { %v3437_v59 = vpop.f32.mrb[16].mxu0 }
0x10f6   :  { %v2072_v60 = vadd.f32 %v3437_v59, %v3027_v58  ;;  %v2066_v61 = vpop.f32.mrb[17].mxu0 }
0x10f7   :  { %v2067_v62 = vadd.f32 %v3027_v58, %v2066_v61 }
0x10f9   :  { %v3676_v0 = vpack.c.bf16 %v2072_v60, %v2067_v62 }
0x10fb   :  { %3678 = vmatprep.subr.msk.bf16.mxu0 %vm3974_vm2, %v3676_v0 }
0x10fc   :  { %3681 = vmatpush3.bf16.xpose.msk.msra.mxu0 %vm3974_vm2, %v3676_v0 }
0x10fd   :  { %3687 = vmatprep.subr.bf16.mxu0 %v3686_v20 }
0x1103   :  { %3454 = vmatmul.mubr.msk.f32.vlgmr.msra.gmra.mrb[18].mxu0 %vm342_vm1, %v1987_v23 }
0x1104   :  { %3689 = vmatpush3.bf16.msra.mxu0 %v3686_v20  ;;  %v3714_v20 = vpack.c.bf16 %v3066_v19, %v3065_v17  ;;  %v3071_v17 = vld [vmem:[%s4425_s2 + $0x1c] ss:$0 sm:$0xff] }
0x1105   :  { %3691 = vmatprep.subr.bf16.mxu0 %v3690_v29 }
0x11d6   :  { %v3455_v1 = vpop.f32.mrb[18].mxu0 }
0x11d7   :  { %v2248_v2 = vmul.f32 0.25, %v3455_v1  ;;  %v2238_v3 = vpop.f32.mrb[19].mxu0  ;;  %v3050_v1 = vld [vmem:[%s4425_s2 + $0x17] ss:$0 sm:$0xff] }
0x11d8   :  { %v2247_v4 = vmul.f32 0.25, %v2238_v3 }
0x11d9   :  { %v2250_v5 = vadd.f32 %v2248_v2, %v3997_v15 }
0x11da   :  { %v2249_v6 = vadd.f32 %v2247_v4, %v4002_v18 }
0x11db   :  { %v2254_v7 = vsel %vm342_vm1, %v2250_v5, -inf }
0x11dc   :  { %2255 = vmax.xlane.f32.xlu1 %v2254_v7  ;;  %v2251_v8 = vsel %vm342_vm1, %v2249_v6, -inf }
0x11dd   :  { %2252 = vmax.xlane.f32.xlu0 %v2251_v8 }
0x1269   :  { %v2256_v9 = vpop.xlane.xlu1 %2255 }
0x126a   :  { %v2258_v10 = vsub.f32 %v2250_v5, %v2256_v9  ;;  %v2253_v63 = vpop.xlane.xlu0 %2252  ;;  %v3051_v5 = vld [vmem:[%s4425_s2 + $0x18] ss:$0 sm:$0xff] }
0x126b   :  { %v2257_v11 = vsub.f32 %v2249_v6, %v2253_v63  ;;  %v3060_v63 = vld [vmem:[%s4431_s8 + $0x48] sm:$0xff] }
0x126c   :  { %v2261_v12 = vmul.f32 1.442695, %v2258_v10  ;;  %v3059_v10 = vld [vmem:[%s4431_s8 + $0x40] sm:$0xff] }
0x126d   :  { %v2259_v13 = vmul.f32 1.442695, %v2257_v11  ;;  %v3702_v11 = vpack.c.bf16 %v3060_v63, %v3059_v10 }
0x126e   :  { %3772 = vpow2.f32 %v2261_v12  ;;  %v3061_v12 = vld [vmem:[%s4431_s8 + $0x50] sm:$0xff] }
0x126f   :  { %3774 = vpow2.f32 %v2259_v13  ;;  %v3062_v13 = vld [vmem:[%s4431_s8 + $0x58] sm:$0xff] }
0x1278   :  { %v3773_v14 = vpop.eup %3772 }
0x1279   :  { %v3775_v16 = vpop.eup %3774  ;;  %v2266_v15 = vsel %vm342_vm1, %v3773_v14, 0.0 }
0x127a   :  { %2267 = vadd.xlane.f32.xlu1 %v2266_v15  ;;  %v2263_v18 = vsel %vm342_vm1, %v3775_v16, 0.0  ;;  %v3064_v15 = vld [vmem:[%s4431_s8 + $0x68] sm:$0xff] }
0x127b   :  { %2264 = vadd.xlane.f32.xlu0 %v2263_v18 }
0x1307   :  { %v2268_v21 = vpop.xlane.xlu1 %2267 }
0x1308   :  { %3776 = vrcp.f32 %v2268_v21  ;;  %v2265_v22 = vpop.xlane.xlu0 %2264  ;;  %v3056_v21 = vld [vmem:[%s4425_s2 + $0x19] ss:$0 sm:$0xff] }
0x1309   :  { %3778 = vrcp.f32 %v2265_v22 }
0x1312   :  { %v3777_v23 = vpop.eup %3776 }
0x1313   :  { %v3779_v24 = vpop.eup %3778  ;;  %v2272_v26 = vmul.f32 %v3777_v23, %v3773_v14  ;;  %v3063_v14 = vld [vmem:[%s4431_s8 + $0x60] sm:$0xff] }
0x1314   :  { %v2271_v25 = vmul.f32 %v3779_v24, %v3775_v16  ;;  %v3706_v16 = vpack.c.bf16 %v3062_v13, %v3061_v12  ;;  %v3710_v18 = vpack.c.bf16 %v3064_v15, %v3063_v14  ;;  %v3070_v14 = vld [vmem:[%s4425_s2 + $0x1b] ss:$0 sm:$0xff] }
0x1316   :  { %3460 = vmatprep.mubr.msk.f32.mxu1 %vm342_vm1, %v2271_v25 }
0x1317   :  { %3461 = vmatmul.mubr.msk.f32.vlgmr.msra.gmra.mrb[24].mxu1 %vm342_vm1, %v2272_v26 }
0x13ea   :  { %v3462_v30 = vpop.f32.mrb[24].mxu1 }
0x13eb   :  { %v2345_v31 = vpop.f32.mrb[25].mxu1 }
0x13ec   :  { %3467 = vmatprep.mubr.msk.f32.mxu0 %vm342_vm1, %v2345_v31 }
0x13ed   :  { %3468 = vmatmul.mubr.msk.f32.vlgmr.msra.gmra.mrb[20].mxu0 %vm342_vm1, %v3462_v30 }
0x13ee   :  { %3693 = vmatpush3.bf16.msra.mxu0 %v3690_v29  ;;  %3474 = vmatprep.mubr.msk.f32.mxu0 %vm342_vm1, %v1893_v41 }
0x13ef   :  { %3703 = vmatprep.subr.bf16.mxu0 %v3702_v11 }
0x13f5   :  { %3475 = vmatmul.mubr.msk.f32.vlgmr.msra.gmra.mrb[20].mxu0 %vm342_vm1, %v3415_v46  ;;  %v3698_v46 = vpack.c.bf16 %v3055_v57, %v3054_v56 }
0x13f6   :  { %3705 = vmatpush3.bf16.msra.mxu0 %v3702_v11 }
0x13f7   :  { %3707 = vmatprep.subr.bf16.mxu0 %v3706_v16 }
0x13fa   :  { %3709 = vmatpush3.bf16.msra.mxu0 %v3706_v16 }
0x13fb   :  { %3711 = vmatprep.subr.bf16.mxu0 %v3710_v18 }
0x13fe   :  { %3713 = vmatpush3.bf16.msra.mxu0 %v3710_v18 }
0x13ff   :  { %3715 = vmatprep.subr.bf16.mxu0 %v3714_v20 }
0x1402   :  { %3717 = vmatpush3.bf16.msra.mxu0 %v3714_v20 }
0x14c8   :  { %v3476_v33 = vpop.f32.mrb[20].mxu0 }
0x14c9   :  { %v2525_v34 = vadd.f32 %v3476_v33, %v3049_v32  ;;  %v2510_v35 = vpop.f32.mrb[21].mxu0 }
0x14ca   :  { %v2524_v36 = vadd.f32 %v3049_v32, %v2510_v35 }
0x14cb   :  { %v2527_v37 = vadd.f32 %v2525_v34, %v4191_v44 }
0x14cc   :  { %v2526_v38 = vadd.f32 %v2524_v36, %v4189_v43  ;;  %v3052_v43 = vld [vmem:[%s4430_s7 + $0x20] sm:$0xff] }
0x14cd   :  { %v2533_v39 = vsel %vm44_vm0, %v2527_v37, 0.0  ;;  %v3694_v55 = vpack.c.bf16 %v3053_v54, %v3052_v43 }
0x14ce   :  { %2534 = vadd.xlane.f32.xlu1 %v2533_v39  ;;  %v2530_v40 = vsel %vm44_vm0, %v2526_v38, 0.0 }
0x14cf   :  { %2531 = vadd.xlane.f32.xlu0 %v2530_v40  ;;  %3695 = vmatprep.subr.bf16.mxu1 %v3694_v55 }
0x14d0   :  { %3697 = vmatpush3.bf16.msra.mxu1 %v3694_v55 }
0x14d1   :  { %3699 = vmatprep.subr.bf16.mxu1 %v3698_v46 }
0x14d4   :  { %3701 = vmatpush3.bf16.msra.mxu1 %v3698_v46 }
0x155b   :  { %v2535_v42 = vpop.xlane.xlu1 %2534 }
0x155c   :  { %v2537_v45 = vmul.f32 0.03125, %v2535_v42  ;;  %v2532_v47 = vpop.xlane.xlu0 %2531 }
0x155d   :  { %v2536_v48 = vmul.f32 0.03125, %v2532_v47 }
0x155e   :  { %v2539_v49 = vsub.f32 %v2527_v37, %v2537_v45 }
0x155f   :  { %v2538_v50 = vsub.f32 %v2526_v38, %v2536_v48  ;;  %v3067_v48 = vld [vmem:[%s4425_s2 + $0x1a] ss:$0 sm:$0xff] }
0x1560   :  { %v2541_v51 = vmul.f32 %v2539_v49, %v2539_v49 }
0x1561   :  { %v2540_v52 = vmul.f32 %v2538_v50, %v2538_v50 }
0x1562   :  { %v2545_v53 = vsel %vm44_vm0, %v2541_v51, 0.0 }
0x1563   :  { %2546 = vadd.xlane.f32.xlu1 %v2545_v53  ;;  %v2542_v44 = vsel %vm44_vm0, %v2540_v52, 0.0 }
0x1564   :  { %2543 = vadd.xlane.f32.xlu0 %v2542_v44 }
0x15f0   :  { %v2547_v41 = vpop.xlane.xlu1 %2546 }
0x15f1   :  { %v2549_v58 = vmul.f32 0.03125, %v2547_v41  ;;  %v2544_v59 = vpop.xlane.xlu0 %2543 }
0x15f2   :  { %v2548_v60 = vmul.f32 0.03125, %v2544_v59 }
0x15f3   :  { %v2551_v61 = vadd.f32 1e-12, %v2549_v58 }
0x15f4   :  { %v2550_v62 = vadd.f32 1e-12, %v2548_v60 }
0x15f5   :  { %3780 = vrsqrt.f32 %v2551_v61 }
0x15f6   :  { %3782 = vrsqrt.f32 %v2550_v62 }
0x15ff   :  { %v3781_v0 = vpop.eup %3780 }
0x1600   :  { %v3783_v2 = vpop.eup %3782  ;;  %v2555_v3 = vmul.f32 %v3781_v0, %v2539_v49  ;;  %v2823_v0 = vld [vmem:[%s4432_s9] sm:$0xff] }
0x1601   :  { %v2554_v4 = vmul.f32 %v3783_v2, %v2538_v50 }
0x1602   :  { %v2561_v6 = vmul.f32 %v3050_v1, %v2555_v3  ;;  %v3818_v3 = vmov 0.0|0.0  }
0x1603   :  { %v2560_v7 = vmul.f32 %v3050_v1, %v2554_v4  ;;  %v2824_v1 = vld [vmem:[%s4432_s9 + $0x8] sm:$0xff]  ;;  %3718 = vmatprep.subr.bf16.mxu1 %v3818_v3  ;;  %v2825_v4 = vld [vmem:[%s4432_s9 + $0x10] sm:$0xff] }
0x1604   :  { %v2567_v9 = vadd.f32 %v3051_v5, %v2561_v6  ;;  %v3719_v2 = vpack.c.bf16 %v2824_v1, %v2823_v0 }
0x1605   :  { %v2566_v8 = vadd.f32 %v3051_v5, %v2560_v7  ;;  %v2826_v5 = vld [vmem:[%s4432_s9 + $0x18] sm:$0xff]  ;;  %v3820_v7 = vmov 0.0  }
0x1606   :  { %v3722_v6 = vpack.c.bf16 %v2826_v5, %v2825_v4 }
0x1607   :  { %3485 = vmatprep.mubr.msk.f32.mxu1 %vm44_vm0, %v2566_v8 }
0x1608   :  { %3486 = vmatmul.mubr.msk.f32.vlgmr.msra.gmra.mrb[26].mxu1 %vm44_vm0, %v2567_v9 }
0x1609   :  { %3720 = vmatpush3.bf16.msra.mxu1 %v3719_v2  ;;  %3515 = vmatprep.mubr.msk.f32.mxu1 %vm3819_vm4, %v3820_v7 }
0x160a   :  { %3721 = vmatprep.subr.bf16.mxu1 %v3818_v3 }
0x160d   :  { %3723 = vmatpush3.bf16.msra.mxu1 %v3722_v6 }
0x16db   :  { %v3487_v22 = vpop.f32.mrb[26].mxu1 }
0x16dc   :  { %v2656_v23 = vadd.f32 %v3487_v22, %v3056_v21  ;;  %v2650_v24 = vpop.f32.mrb[27].mxu1 }
0x16dd   :  { %v2651_v25 = vadd.f32 %v3056_v21, %v2650_v24 }
0x16de   :  { %v2662_v26 = vmul.f32 0.044715, %v2656_v23  ;;  %v2660_v42 = vmul.f32 0.5, %v2656_v23 }
0x16df   :  { %v2661_v27 = vmul.f32 0.044715, %v2651_v25  ;;  %v2659_v39 = vmul.f32 0.5, %v2651_v25 }
0x16e0   :  { %v2664_v28 = vmul.f32 %v2662_v26, %v2656_v23 }
0x16e1   :  { %v2663_v29 = vmul.f32 %v2661_v27, %v2651_v25  ;;  %v3072_v27 = vld [vmem:[%s4425_s2 + $0x2] ss:$0 sm:$0xff] }
0x16e2   :  { %v2666_v30 = vmul.f32 %v2664_v28, %v2656_v23 }
0x16e3   :  { %v2665_v31 = vmul.f32 %v2663_v29, %v2651_v25 }
0x16e4   :  { %v2668_v32 = vadd.f32 %v2666_v30, %v2656_v23 }
0x16e5   :  { %v2667_v33 = vadd.f32 %v2665_v31, %v2651_v25 }
0x16e6   :  { %v2670_v34 = vmul.f32 0.7978846, %v2668_v32 }
0x16e7   :  { %v2669_v35 = vmul.f32 0.7978846, %v2667_v33 }
0x16e8   :  { %3784 = vtanh.f32 %v2670_v34 }
0x16e9   :  { %3786 = vtanh.f32 %v2669_v35 }
0x16f2   :  { %v3785_v36 = vpop.eup %3784 }
0x16f3   :  { %v3787_v37 = vpop.eup %3786  ;;  %v2674_v38 = vadd.f32 1.0, %v3785_v36 }
0x16f4   :  { %v2673_v40 = vadd.f32 1.0, %v3787_v37 }
0x16f5   :  { %v2676_v47 = vmul.f32 %v2674_v38, %v2660_v42 }
0x16f6   :  { %v2675_v45 = vmul.f32 %v2673_v40, %v2659_v39 }
0x16f8   :  { %3504 = vmatprep.mubr.msk.f32.mxu0 %vm1323_vm3, %v2675_v45 }
0x16f9   :  { %3505 = vmatmul.mubr.msk.f32.vlgmr.msra.gmra.mrb[22].mxu0 %vm1323_vm3, %v2676_v47 }
0x17cc   :  { %v3506_v49 = vpop.f32.mrb[22].mxu0 }
0x17cd   :  { %v2769_v50 = vadd.f32 %v3506_v49, %v3067_v48  ;;  %v2763_v51 = vpop.f32.mrb[23].mxu0 }
0x17ce   :  { %v2764_v52 = vadd.f32 %v3067_v48, %v2763_v51 }
0x17cf   :  { %v2773_v53 = vadd.f32 %v2769_v50, %v2567_v9 }
0x17d0   :  { %v2772_v44 = vadd.f32 %v2764_v52, %v2566_v8 }
0x17d1   :  { %v2779_v43 = vsel %vm44_vm0, %v2773_v53, 0.0 }
0x17d2   :  { %2780 = vadd.xlane.f32.xlu0 %v2779_v43  ;;  %v2776_v54 = vsel %vm44_vm0, %v2772_v44, 0.0 }
0x17d3   :  { %2777 = vadd.xlane.f32.xlu1 %v2776_v54 }
0x185f   :  { %v2781_v55 = vpop.xlane.xlu0 %2780 }
0x1860   :  { %v2783_v56 = vmul.f32 0.03125, %v2781_v55  ;;  %v2778_v57 = vpop.xlane.xlu1 %2777 }
0x1861   :  { %v2782_v46 = vmul.f32 0.03125, %v2778_v57 }
0x1862   :  { %v2785_v41 = vsub.f32 %v2773_v53, %v2783_v56 }
0x1863   :  { %v2784_v58 = vsub.f32 %v2772_v44, %v2782_v46 }
0x1864   :  { %v2787_v59 = vmul.f32 %v2785_v41, %v2785_v41 }
0x1865   :  { %v2786_v60 = vmul.f32 %v2784_v58, %v2784_v58 }
0x1866   :  { %v2791_v61 = vsel %vm44_vm0, %v2787_v59, 0.0 }
0x1867   :  { %2792 = vadd.xlane.f32.xlu0 %v2791_v61  ;;  %v2788_v62 = vsel %vm44_vm0, %v2786_v60, 0.0 }
0x1868   :  { %2789 = vadd.xlane.f32.xlu1 %v2788_v62 }
0x18f4   :  { %v2793_v8 = vpop.xlane.xlu0 %2792 }
0x18f5   :  { %v2795_v9 = vmul.f32 0.03125, %v2793_v8  ;;  %v2790_v10 = vpop.xlane.xlu1 %2789 }
0x18f6   :  { %v2794_v63 = vmul.f32 0.03125, %v2790_v10 }
0x18f7   :  { %v2797_v11 = vadd.f32 1e-12, %v2795_v9 }
0x18f8   :  { %v2796_v12 = vadd.f32 1e-12, %v2794_v63 }
0x18f9   :  { %3788 = vrsqrt.f32 %v2797_v11 }
0x18fa   :  { %3790 = vrsqrt.f32 %v2796_v12 }
0x1903   :  { %v3789_v13 = vpop.eup %3788 }
0x1904   :  { %v3791_v16 = vpop.eup %3790  ;;  %v2801_v15 = vmul.f32 %v3789_v13, %v2785_v41 }
0x1905   :  { %v2800_v18 = vmul.f32 %v3791_v16, %v2784_v58 }
0x1906   :  { %v2807_v19 = vmul.f32 %v3070_v14, %v2801_v15 }
0x1907   :  { %v2806_v20 = vmul.f32 %v3070_v14, %v2800_v18 }
0x1908   :  { %v2813_v21 = vadd.f32 %v3071_v17, %v2807_v19 }
0x1909   :  { %v2812_v22 = vadd.f32 %v3071_v17, %v2806_v20 }
0x190a   :  { %v2815_v23 = vsel %vm44_vm0, %v2813_v21, 0.0  ;;  %v2819_v24 = vrot.slane %v2813_v21, 7 }
0x190b   :  { %v2814_v25 = vsel %vm44_vm0, %v2812_v22, 0.0  ;;  %2817 = vst [vmem:[%s4433_s10 + $0x8] sm:$0xff] %v2815_v23 }
0x190c   :  { %2816 = vst [vmem:[%s4433_s10] sm:$0xff] %v2814_v25  ;;  %v2822_v26 = vsel %vm2821_vm5, %v2812_v22, %v2819_v24 }
0x190d   :  { %3516 = vmatmul.mubr.msk.f32.vlgmr.msra.gmra.mrb[28].mxu1 %vm44_vm0, %v2822_v26 }
0x19e0   :  { %v2901_v28 = vpop.f32.mrb[28].mxu1 }
0x19e1   :  { %v2902_v29 = vadd.f32 %v3072_v27, %v2901_v28  ;;  %v3517_v30 = vpop.f32.mrb[29].mxu1 }
0x19e3   :  { %3792 = vtanh.f32 %v2902_v29 }
0x19ed   :  { %v3793_v31 = vpop.eup %3792 }
0x19ee   :  { %v2906_v32 = vsel %vm44_vm0, %v3793_v31, 0.0 }
0x19ef   :  { %2907 = vst [vmem:[#allocation2] sm:$0x3] %v2906_v32 }
0x19f0   :  { %3805 = shalt.err (!%p3802_p4)
}
0x19f1   :  { %s3806_s13 = scalar_lea.hbm %s4434_s11, 32 }
0x19f2   :  { %p3807_p5 = scmp.ne.s32.totalorder %s4434_s11, %s3806_s13  ;;  %p3810_p6 = scmp.lt.u32.totalorder %s3806_s13, %s4434_s11 }
0x19f4   :  { %p3812_p7 = pnand %p3810_p6, %p3807_p5 }
0x19f6   :  { %3815 = shalt.err (!%p3812_p7)
}
0x19f7   :  { %2919 = dma.vmem_to_hbm [thread:$0]  %s2917_s3, 32, %s4434_s11, [#allocation3]  }
0x19f8   :  { %3816 = dma.done.wait [#allocation3], 32  }
0x19f9   :  { %3817 = vsyncadd [#allocation3], 4294967264 }
0x19fa   :  { %2925 = vsyncpa [#allocation3], 1 }

</bundles_post_ra>
